<compile_context>
chip_gen: v6e
topology: v6e:2x2x1
jax: 0.10.0
libtpu: 0.0.40
codegen_flags: <defaults>
</compile_context>

<pallas_src>
from functools import partial

import jax
import jax.numpy as jnp
from jax.experimental import pallas as pl
from jax.experimental.pallas import tpu as pltpu


def _make_dense_kernel(xp_ref, w_ref, out_ref, *, k):
    """One batch element: fused k x k conv (no bias) + ReLU + channel concat.

    xp_ref : (H + k - 1, W + k - 1, Cin)  f32   spatially padded input
    w_ref  : (k * k, Cin, G)              bf16  per-tap weight matrices
    out_ref: (H, W, Cin + G)              f32   [x , relu(conv(x))]
    """
    H, W, _ = out_ref.shape
    Cin = xp_ref.shape[-1]
    G = w_ref.shape[-1]
    pad = (k - 1) // 2

    xp = xp_ref[...]                               # f32 (H+k-1, W+k-1, Cin)
    xp_bf = xp.astype(jnp.bfloat16)                # bf16 MXU operand

    acc = jnp.zeros((H * W, G), jnp.float32)       # f32 accumulation
    for t in range(k * k):                         # unrolled tap reduction
        di, dj = t // k, t % k
        patch = xp_bf[di:di + H, dj:dj + W, :].reshape(H * W, Cin)
        acc = acc + jnp.dot(patch, w_ref[t],
                            preferred_element_type=jnp.float32)

    new = jnp.maximum(acc, 0.0).reshape(H, W, G)
    passthrough = xp[pad:pad + H, pad:pad + W, :]
    # single dense store of the full concat slab (lane-dense writeback)
    out_ref[...] = jnp.concatenate(
        [passthrough.astype(out_ref.dtype), new.astype(out_ref.dtype)],
        axis=-1)


def make_dense_forward(w_taps_bf16, x_nchw, *, k=3):
    """w_taps_bf16: (k*k, Cin, G) bf16.  x_nchw: (N, Cin, H, W) f32.
    Returns (N, Cin + G, H, W) f32 == torch.cat((x, relu(conv(x))), 1)."""
    N, Cin, H, W = x_nchw.shape
    G = w_taps_bf16.shape[-1]
    pad = (k - 1) // 2

    x = jnp.transpose(x_nchw.astype(jnp.float32), (0, 2, 3, 1))    # NHWC
    xp = jnp.pad(x, ((0, 0), (pad, pad), (pad, pad), (0, 0)))      # halo pad

    out_nhwc = pl.pallas_call(
        partial(_make_dense_kernel, k=k),
        out_shape=jax.ShapeDtypeStruct((N, H, W, Cin + G), jnp.float32),
        grid_spec=pltpu.PrefetchScalarGridSpec(
            num_scalar_prefetch=0,
            grid=(N,),
            in_specs=[
                pl.BlockSpec((None, H + 2 * pad, W + 2 * pad, Cin),
                             lambda n: (n, 0, 0, 0)),
                pl.BlockSpec((k * k, Cin, G), lambda n: (0, 0, 0)),
            ],
            out_specs=pl.BlockSpec((None, H, W, Cin + G),
                                   lambda n: (n, 0, 0, 0)),
        ),
        compiler_params=pltpu.CompilerParams(
            dimension_semantics=("parallel",)),
    )(xp, w_taps_bf16)

    return jnp.transpose(out_nhwc, (0, 3, 1, 2))                   # NCHW


def init_weight(key, cin, growth_rate, k=3):
    """Deterministic Conv2d-style init (uniform +-1/sqrt(fan_in)), laid out as
    (k*k, Cin, G) so each tap is a ready-to-use (Cin, G) matmul operand.
    NOTE: real PyTorch weights (G, Cin, kh, kw) must be permuted to
    (kh, kw, Cin, G) before reshaping to (k*k, Cin, G)."""
    bound = 1.0 / (cin * k * k) ** 0.5
    w = jax.random.uniform(key, (k, k, cin, growth_rate),
                           jnp.float32, -bound, bound)
    return w.reshape(k * k, cin, growth_rate)


def _reference(w_taps_f32, x_nchw, *, k=3):
    """Pure-JAX reference: relu(conv_nobias(x)) concatenated after x."""
    N, Cin, H, W = x_nchw.shape
    G = w_taps_f32.shape[-1]
    x = jnp.transpose(x_nchw, (0, 2, 3, 1))
    w_hwio = w_taps_f32.reshape(k, k, Cin, G)
    y = jax.lax.conv_general_dilated(
        x, w_hwio, window_strides=(1, 1), padding="SAME",
        dimension_numbers=("NHWC", "HWIO", "NHWC"))
    y = jnp.maximum(y, 0.0)
    out = jnp.concatenate([x, y], axis=-1)
    return jnp.transpose(out, (0, 3, 1, 2))


if __name__ == "__main__":
    key = jax.random.PRNGKey(0)
    k_w, k_x = jax.random.split(key)

    N, Cin, H, W = 2, 4, 16, 16
    growth_rate = 32

    w_f32 = init_weight(k_w, Cin, growth_rate)        # (9, Cin, G) f32 master
    w_bf16 = w_f32.astype(jnp.bfloat16)               # kernel operand
    x = jax.random.normal(k_x, (N, Cin, H, W), jnp.float32)

    fwd = jax.jit(make_dense_forward)
    out = jax.block_until_ready(fwd(w_bf16, x))

    assert out.shape == (N, Cin + growth_rate, H, W), out.shape
    assert bool(jnp.all(jnp.isfinite(out)))

    # Correctness: passthrough channels must be bit-exact; conv channels match
    # an f32 reference (built with the same bf16-rounded weights) up to bf16
    # rounding of the activations.
    assert bool(jnp.all(out[:, :Cin] == x))
    ref = _reference(w_bf16.astype(jnp.float32), x)
    max_err = float(jnp.max(jnp.abs(out - ref)))
    assert max_err < 5e-2, max_err

    print("KERNEL_OK")
</pallas_src>

<mosaic_0001>
module attributes {stable_mosaic.version = 11 : i64} {
  func.func @_make_dense_kernel(%arg0: i32, %arg1: memref<1x18x18x4xf32, #tpu.memory_space<vmem>>, %arg2: memref<9x4x32xbf16, #tpu.memory_space<vmem>>, %arg3: memref<1x16x16x36xf32, #tpu.memory_space<vmem>>) attributes {dimension_semantics = [#tpu.dimension_semantics<parallel>], iteration_bounds = array<i64: 2>, scalar_prefetch = 0 : i64, scratch_operands = 0 : i64, tpu.core_type = #tpu.core_type<tc>, window_params = [{transform_indices = @transform_0, window_bounds = array<i64: 1, 18, 18, 4>}, {pipeline_mode = #tpu.pipeline_mode<synchronous>, transform_indices = @transform_1, window_bounds = array<i64: 9, 4, 32>}, {transform_indices = @transform_2, window_bounds = array<i64: 1, 16, 16, 36>}]} {
    %c0 = arith.constant 0 : index
    %c0_0 = arith.constant 0 : index
    %c0_1 = arith.constant 0 : index
    %c0_2 = arith.constant 0 : index
    %0 = vector.load %arg1[%c0, %c0_0, %c0_1, %c0_2] : memref<1x18x18x4xf32, #tpu.memory_space<vmem>>, vector<1x18x18x4xf32>
    %1 = vector.shape_cast %0 : vector<1x18x18x4xf32> to vector<18x18x4xf32>
    %2 = arith.truncf %1 : vector<18x18x4xf32> to vector<18x18x4xbf16>
    %cst = arith.constant 0.000000e+00 : f32
    %3 = vector.broadcast %cst : f32 to vector<256x32xf32>
    %4 = vector.extract_strided_slice %2 {offsets = [0, 0, 0], sizes = [16, 16, 4], strides = [1, 1, 1]} : vector<18x18x4xbf16> to vector<16x16x4xbf16>
    %5 = vector.shape_cast %4 : vector<16x16x4xbf16> to vector<256x4xbf16>
    %c0_3 = arith.constant 0 : index
    %c0_4 = arith.constant 0 : index
    %c0_5 = arith.constant 0 : index
    %6 = vector.load %arg2[%c0_3, %c0_4, %c0_5] : memref<9x4x32xbf16, #tpu.memory_space<vmem>>, vector<1x4x32xbf16>
    %7 = vector.shape_cast %6 : vector<1x4x32xbf16> to vector<4x32xbf16>
    %cst_6 = arith.constant dense<0.000000e+00> : vector<256x32xf32>
    %8 = tpu.matmul %5, %7, %cst_6 {dimension_numbers = #tpu.dot_dimension_numbers<[1], [0], [0], [1], [0, 0, 1, 1], [], []>} : vector<256x4xbf16>, vector<4x32xbf16>, vector<256x32xf32> -> vector<256x32xf32>
    %9 = arith.addf %3, %8 : vector<256x32xf32>
    %10 = vector.extract_strided_slice %2 {offsets = [0, 1, 0], sizes = [16, 16, 4], strides = [1, 1, 1]} : vector<18x18x4xbf16> to vector<16x16x4xbf16>
    %11 = vector.shape_cast %10 : vector<16x16x4xbf16> to vector<256x4xbf16>
    %c1 = arith.constant 1 : index
    %c0_7 = arith.constant 0 : index
    %c0_8 = arith.constant 0 : index
    %12 = vector.load %arg2[%c1, %c0_7, %c0_8] : memref<9x4x32xbf16, #tpu.memory_space<vmem>>, vector<1x4x32xbf16>
    %13 = vector.shape_cast %12 : vector<1x4x32xbf16> to vector<4x32xbf16>
    %cst_9 = arith.constant dense<0.000000e+00> : vector<256x32xf32>
    %14 = tpu.matmul %11, %13, %cst_9 {dimension_numbers = #tpu.dot_dimension_numbers<[1], [0], [0], [1], [0, 0, 1, 1], [], []>} : vector<256x4xbf16>, vector<4x32xbf16>, vector<256x32xf32> -> vector<256x32xf32>
    %15 = arith.addf %9, %14 : vector<256x32xf32>
    %16 = vector.extract_strided_slice %2 {offsets = [0, 2, 0], sizes = [16, 16, 4], strides = [1, 1, 1]} : vector<18x18x4xbf16> to vector<16x16x4xbf16>
    %17 = vector.shape_cast %16 : vector<16x16x4xbf16> to vector<256x4xbf16>
    %c2 = arith.constant 2 : index
    %c0_10 = arith.constant 0 : index
    %c0_11 = arith.constant 0 : index
    %18 = vector.load %arg2[%c2, %c0_10, %c0_11] : memref<9x4x32xbf16, #tpu.memory_space<vmem>>, vector<1x4x32xbf16>
    %19 = vector.shape_cast %18 : vector<1x4x32xbf16> to vector<4x32xbf16>
    %cst_12 = arith.constant dense<0.000000e+00> : vector<256x32xf32>
    %20 = tpu.matmul %17, %19, %cst_12 {dimension_numbers = #tpu.dot_dimension_numbers<[1], [0], [0], [1], [0, 0, 1, 1], [], []>} : vector<256x4xbf16>, vector<4x32xbf16>, vector<256x32xf32> -> vector<256x32xf32>
    %21 = arith.addf %15, %20 : vector<256x32xf32>
    %22 = vector.extract_strided_slice %2 {offsets = [1, 0, 0], sizes = [16, 16, 4], strides = [1, 1, 1]} : vector<18x18x4xbf16> to vector<16x16x4xbf16>
    %23 = vector.shape_cast %22 : vector<16x16x4xbf16> to vector<256x4xbf16>
    %c3 = arith.constant 3 : index
    %c0_13 = arith.constant 0 : index
    %c0_14 = arith.constant 0 : index
    %24 = vector.load %arg2[%c3, %c0_13, %c0_14] : memref<9x4x32xbf16, #tpu.memory_space<vmem>>, vector<1x4x32xbf16>
    %25 = vector.shape_cast %24 : vector<1x4x32xbf16> to vector<4x32xbf16>
    %cst_15 = arith.constant dense<0.000000e+00> : vector<256x32xf32>
    %26 = tpu.matmul %23, %25, %cst_15 {dimension_numbers = #tpu.dot_dimension_numbers<[1], [0], [0], [1], [0, 0, 1, 1], [], []>} : vector<256x4xbf16>, vector<4x32xbf16>, vector<256x32xf32> -> vector<256x32xf32>
    %27 = arith.addf %21, %26 : vector<256x32xf32>
    %28 = vector.extract_strided_slice %2 {offsets = [1, 1, 0], sizes = [16, 16, 4], strides = [1, 1, 1]} : vector<18x18x4xbf16> to vector<16x16x4xbf16>
    %29 = vector.shape_cast %28 : vector<16x16x4xbf16> to vector<256x4xbf16>
    %c4 = arith.constant 4 : index
    %c0_16 = arith.constant 0 : index
    %c0_17 = arith.constant 0 : index
    %30 = vector.load %arg2[%c4, %c0_16, %c0_17] : memref<9x4x32xbf16, #tpu.memory_space<vmem>>, vector<1x4x32xbf16>
    %31 = vector.shape_cast %30 : vector<1x4x32xbf16> to vector<4x32xbf16>
    %cst_18 = arith.constant dense<0.000000e+00> : vector<256x32xf32>
    %32 = tpu.matmul %29, %31, %cst_18 {dimension_numbers = #tpu.dot_dimension_numbers<[1], [0], [0], [1], [0, 0, 1, 1], [], []>} : vector<256x4xbf16>, vector<4x32xbf16>, vector<256x32xf32> -> vector<256x32xf32>
    %33 = arith.addf %27, %32 : vector<256x32xf32>
    %34 = vector.extract_strided_slice %2 {offsets = [1, 2, 0], sizes = [16, 16, 4], strides = [1, 1, 1]} : vector<18x18x4xbf16> to vector<16x16x4xbf16>
    %35 = vector.shape_cast %34 : vector<16x16x4xbf16> to vector<256x4xbf16>
    %c5 = arith.constant 5 : index
    %c0_19 = arith.constant 0 : index
    %c0_20 = arith.constant 0 : index
    %36 = vector.load %arg2[%c5, %c0_19, %c0_20] : memref<9x4x32xbf16, #tpu.memory_space<vmem>>, vector<1x4x32xbf16>
    %37 = vector.shape_cast %36 : vector<1x4x32xbf16> to vector<4x32xbf16>
    %cst_21 = arith.constant dense<0.000000e+00> : vector<256x32xf32>
    %38 = tpu.matmul %35, %37, %cst_21 {dimension_numbers = #tpu.dot_dimension_numbers<[1], [0], [0], [1], [0, 0, 1, 1], [], []>} : vector<256x4xbf16>, vector<4x32xbf16>, vector<256x32xf32> -> vector<256x32xf32>
    %39 = arith.addf %33, %38 : vector<256x32xf32>
    %40 = vector.extract_strided_slice %2 {offsets = [2, 0, 0], sizes = [16, 16, 4], strides = [1, 1, 1]} : vector<18x18x4xbf16> to vector<16x16x4xbf16>
    %41 = vector.shape_cast %40 : vector<16x16x4xbf16> to vector<256x4xbf16>
    %c6 = arith.constant 6 : index
    %c0_22 = arith.constant 0 : index
    %c0_23 = arith.constant 0 : index
    %42 = vector.load %arg2[%c6, %c0_22, %c0_23] : memref<9x4x32xbf16, #tpu.memory_space<vmem>>, vector<1x4x32xbf16>
    %43 = vector.shape_cast %42 : vector<1x4x32xbf16> to vector<4x32xbf16>
    %cst_24 = arith.constant dense<0.000000e+00> : vector<256x32xf32>
    %44 = tpu.matmul %41, %43, %cst_24 {dimension_numbers = #tpu.dot_dimension_numbers<[1], [0], [0], [1], [0, 0, 1, 1], [], []>} : vector<256x4xbf16>, vector<4x32xbf16>, vector<256x32xf32> -> vector<256x32xf32>
    %45 = arith.addf %39, %44 : vector<256x32xf32>
    %46 = vector.extract_strided_slice %2 {offsets = [2, 1, 0], sizes = [16, 16, 4], strides = [1, 1, 1]} : vector<18x18x4xbf16> to vector<16x16x4xbf16>
    %47 = vector.shape_cast %46 : vector<16x16x4xbf16> to vector<256x4xbf16>
    %c7 = arith.constant 7 : index
    %c0_25 = arith.constant 0 : index
    %c0_26 = arith.constant 0 : index
    %48 = vector.load %arg2[%c7, %c0_25, %c0_26] : memref<9x4x32xbf16, #tpu.memory_space<vmem>>, vector<1x4x32xbf16>
    %49 = vector.shape_cast %48 : vector<1x4x32xbf16> to vector<4x32xbf16>
    %cst_27 = arith.constant dense<0.000000e+00> : vector<256x32xf32>
    %50 = tpu.matmul %47, %49, %cst_27 {dimension_numbers = #tpu.dot_dimension_numbers<[1], [0], [0], [1], [0, 0, 1, 1], [], []>} : vector<256x4xbf16>, vector<4x32xbf16>, vector<256x32xf32> -> vector<256x32xf32>
    %51 = arith.addf %45, %50 : vector<256x32xf32>
    %52 = vector.extract_strided_slice %2 {offsets = [2, 2, 0], sizes = [16, 16, 4], strides = [1, 1, 1]} : vector<18x18x4xbf16> to vector<16x16x4xbf16>
    %53 = vector.shape_cast %52 : vector<16x16x4xbf16> to vector<256x4xbf16>
    %c8 = arith.constant 8 : index
    %c0_28 = arith.constant 0 : index
    %c0_29 = arith.constant 0 : index
    %54 = vector.load %arg2[%c8, %c0_28, %c0_29] : memref<9x4x32xbf16, #tpu.memory_space<vmem>>, vector<1x4x32xbf16>
    %55 = vector.shape_cast %54 : vector<1x4x32xbf16> to vector<4x32xbf16>
    %cst_30 = arith.constant dense<0.000000e+00> : vector<256x32xf32>
    %56 = tpu.matmul %53, %55, %cst_30 {dimension_numbers = #tpu.dot_dimension_numbers<[1], [0], [0], [1], [0, 0, 1, 1], [], []>} : vector<256x4xbf16>, vector<4x32xbf16>, vector<256x32xf32> -> vector<256x32xf32>
    %57 = arith.addf %51, %56 : vector<256x32xf32>
    %cst_31 = arith.constant 0.000000e+00 : f32
    %58 = vector.broadcast %cst_31 : f32 to vector<256x32xf32>
    %59 = arith.maximumf %57, %58 : vector<256x32xf32>
    %60 = vector.shape_cast %59 : vector<256x32xf32> to vector<16x16x32xf32>
    %61 = vector.extract_strided_slice %1 {offsets = [1, 1, 0], sizes = [16, 16, 4], strides = [1, 1, 1]} : vector<18x18x4xf32> to vector<16x16x4xf32>
    %62 = tpu.concatenate %61, %60 in 2 : vector<16x16x4xf32>, vector<16x16x32xf32> -> vector<16x16x36xf32>
    %c0_32 = arith.constant 0 : index
    %c0_33 = arith.constant 0 : index
    %c0_34 = arith.constant 0 : index
    %c0_35 = arith.constant 0 : index
    %63 = vector.load %arg3[%c0_32, %c0_33, %c0_34, %c0_35] : memref<1x16x16x36xf32, #tpu.memory_space<vmem>>, vector<1x16x16x36xf32>
    %64 = vector.shape_cast %63 : vector<1x16x16x36xf32> to vector<16x16x36xf32>
    %65 = vector.shape_cast %62 : vector<16x16x36xf32> to vector<1x16x16x36xf32>
    tpu.vector_store %arg3[%c0_32, %c0_33, %c0_34, %c0_35], %65 {strides = array<i32>} : memref<1x16x16x36xf32, #tpu.memory_space<vmem>>, vector<1x16x16x36xf32>,
    return
  }
  func.func @transform_0(%arg0: i32) -> (i32, i32, i32, i32) {
    %c0_i32 = arith.constant 0 : i32
    %c0_i32_0 = arith.constant 0 : i32
    %c0_i32_1 = arith.constant 0 : i32
    %c0_i32_2 = arith.constant 0 : i32
    return %arg0, %c0_i32, %c0_i32_0, %c0_i32_1 : i32, i32, i32, i32
  }
  func.func @transform_1(%arg0: i32) -> (i32, i32, i32) {
    %c0_i32 = arith.constant 0 : i32
    %c0_i32_0 = arith.constant 0 : i32
    %c0_i32_1 = arith.constant 0 : i32
    %c0_i32_2 = arith.constant 0 : i32
    return %c0_i32, %c0_i32_0, %c0_i32_1 : i32, i32, i32
  }
  func.func @transform_2(%arg0: i32) -> (i32, i32, i32, i32) {
    %c0_i32 = arith.constant 0 : i32
    %c0_i32_0 = arith.constant 0 : i32
    %c0_i32_1 = arith.constant 0 : i32
    %c0_i32_2 = arith.constant 0 : i32
    return %arg0, %c0_i32, %c0_i32_0, %c0_i32_1 : i32, i32, i32, i32
  }
}

</mosaic_0001>

<bundles_post_ra>
// kernel: make_dense_forward.1
= control target key start
LH: loop header
LB: loop body
LE: loop exit
PB: predicated region body
PF: predicated region fallthrough
CT: control target
= control target key end

     0   :  { %7 = vsyncpa [#allocation3], 0  ;;  %s5083_s0 = inlined_call_operand.vmem [shape: f32[2,18,18,4], index: 0, kind: input, shape index: {}]   ;;  %s5084_s1 = inlined_call_operand.vmem [shape: bf16[9,4,32], index: 1, kind: input, shape index: {}]   ;;  %s5085_s2 = inlined_call_operand.hbm [shape: f32[2,16,16,36], index: 2, kind: output, shape index: {}]  }
   0x1   :  { %9 = vsyncpa [#allocation3 + $0x1], 0  ;;  %s3643_s9 = smov 0   ;;  %s3645_s10 = smov 0  }
   0x2   :  { %s3647_s11 = smov 0   ;;  %s3649_s12 = smov 0  }
   0x3 LB: > { %s3664_s13 = sadd.s32 4294967295, %s3622_s12   ;;  %s2836_s14 = sadd.s32 4294967294, %s3622_s12   ;;  %s3622_s12 = sphi %s3649_s12, %s5110_s12   ;;  %s3618_s11 = sphi %s3647_s11, %s5109_s11   ;;  %s3614_s10 = sphi %s3645_s10, %s5108_s10   ;;  %s3610_s9 = sphi %s3643_s9, %s5107_s9  }
   0x4   : > { %s3668_s15 = sadd.s32 1, %s3622_s12   ;;  %s69_s16 = sadd.s32 1, %s3618_s11 }
   0x5   : > { %s66_s17 = ssub.s32 %s3622_s12, %s3668_s15  ;;  %p79_p0 = scmp.ne.s32.totalorder %s3618_s11, %s3614_s10 }
   0x6   : > { %p67_p1 = scmp.eq.s32.totalorder %s66_s17, 0  ;;  %p80_p2 = scmp.eq.s32.totalorder %s3664_s13, 1 }
   0x7   : > { %p85_p3 = scmp.ne.s32.totalorder %s3614_s10, %s3610_s9  ;;  %p86_p4 = scmp.eq.s32.totalorder %s2836_s14, 1 }
   0x8   : > { %s3679_s18 = scalar_select %p67_p1, %s3618_s11, %s69_s16  }
   0x9   : > { %p3681_p5 = por %p80_p2, %p79_p0  ;;  %p3685_p6 = por %p86_p4, %p85_p3 }
   0xa   : > { %p2839_p7 = scmp.ge.s32.totalorder %s3622_s12, 1  ;;  %p115_p8 = scmp.lt.s32.totalorder %s3622_s12, 3 }
   0xc   : > { %p116_p9 = pnand %p2839_p7, %p115_p8 }
   0xe   : > { %119 = sbr.rel (%p116_p9) target bundleno = 693 (0x2b5), region = 28 }
  0x13   : > { %v2842_v0 = vld [vmem:[%s5084_s1 + $0x2] sm:$0x3]  ;;  %vm478_vm0 = vcmask 1041408   ;;  %p137_p10 = scmp.lt.s32.totalorder %s3664_s13, 1  ;;  %v233_v2 = vld [vmem:[%s5084_s1] sm:$0x3] }
  0x14   : > { %3462 = vmatprep.subr.msk.bf16.mxu1 %vm478_vm0, %v2842_v0  ;;  %3461 = vmatprep.subr.msk.bf16.mxu0 %vm478_vm0, %v2842_v0  ;;  %v480_v1 = vsel %vm478_vm0, %v2842_v0, 0  ;;  %v2875_v3 = vld [vmem:[%s5084_s1 + $0x4] sm:$0x3]  ;;  %vm234_vm1 = vsmask.f32 7424  ;;  %vm429_vm2 = vcmask 31744  }
  0x15   : > { %3460 = vmatpush3.bf16.msra.mxu1 %v480_v1  ;;  %3154 = vmatpush3.bf16.msra.mxu0 %v480_v1  ;;  %s138_s27 = scalar_select %p137_p10, %s3664_s13, 1  ;;  %v3730_v17 = vsel %vm478_vm0, %v233_v2, 0  ;;  %v971_v39 = vsel %vm478_vm0, %v2875_v3, 0  ;;  %vm871_vm3 = vcmask 1046528   ;;  %vm2468_vm4 = vcmask 1040384  }
  0x16   : > { %3463 = vmatprep.subr.msk.bf16.mxu1 %vm478_vm0, %v233_v2  ;;  %3464 = vmatprep.subr.msk.bf16.mxu0 %vm478_vm0, %v2875_v3  ;;  %v3787_v2 = vld [vmem:[%s5084_s1 + $0x8] sm:$0x3]  ;;  %s3624_s25 = smov 4   ;;  %s134_s26 = sand.u32 1, %s3614_s10   ;;  %vm2709_vm5 = vcmask 293889   ;;  %vm2713_vm6 = vcmask 286720  }
  0x17   : > { %s3471_s28 = smul.u32 432, %s138_s27  ;;  %s2840_s27 = sshll.u32 %s134_s26, 8  ;;  %vm2711_vm7 = vcmask 293888  }
  0x18   : > { %s2999_s29 = sshll.u32 %s3664_s13, 12  ;;  %s5043_s13 = scalar_lea.sflag [#allocation3], %s134_s26 }
  0x19   : > { %s3710_s3 = scalar_lea.vmem %s5083_s0, %s3471_s28  ;;  %s4840_s28 = scalar_lea.vmem [#allocation2], %s2840_s27 }
  0x1a   : > { %v143_v4 = vld [vmem:[%s3710_s3] sm:$0xff]  ;;  %v144_v5 = vld [vmem:[%s3710_s3 + $0x8] sm:$0xff]  ;;  %v145_v6 = vld [vmem:[%s3710_s3 + $0x10] sm:$0x3]  ;;  %s2774_s30 = sshll.u32 %s4840_s28, 4  ;;  %s5031_s6 = scalar_lea.hbm %s5085_s2, %s2999_s29  ;;  %s5033_s30 = int_to_ptr.vmem [resolvable:$true] %s2774_s30 }
  0x1b   : > { %v3715_v7 = vpack.c.bf16 %v144_v5, %v143_v4  ;;  %v3717_v8 = vpack.c.bf16 %v145_v6, %v145_v6  ;;  %v167_v9 = vld [vmem:[%s3710_s3 + $0xc0] sm:$0xff]  ;;  %v168_v10 = vld [vmem:[%s3710_s3 + $0xc8] sm:$0xff]  ;;  %v169_v11 = vld [vmem:[%s3710_s3 + $0xd0] sm:$0x3]  ;;  %s3562_s7 = scalar_lea.vmem %s5033_s30, 4096  ;;  %s3625_s8 = smov [#allocation2]  }
  0x1c   : > { %v3722_v12 = vpack.c.bf16 %v168_v10, %v167_v9  ;;  %v3724_v13 = vpack.c.bf16 %v169_v11, %v169_v11  ;;  %v146_v14 = vld [vmem:[%s3710_s3 + $0x18] sm:$0xff]  ;;  %v147_v15 = vld [vmem:[%s3710_s3 + $0x20] sm:$0xff]  ;;  %v148_v16 = vld [vmem:[%s3710_s3 + $0x28] sm:$0x3]  ;;  %p3563_p11 = scmp.ne.s32.totalorder %s5033_s30, %s3562_s7  ;;  %s3566_s14 = sshll.u32 %s3625_s8, 4  ;;  %s3567_s14 = int_to_ptr.vmem [resolvable:$false] %s3566_s14 }
  0x1d   : > { %v236_v18 = vshrl.u32 %v3715_v7, 16  ;;  %v238_v19 = vshll.u32 %v3715_v7, 16  ;;  %v243_v20 = vshll.u32 %v3717_v8, 16  ;;  %v3735_v21 = vpack.c.bf16 %v147_v15, %v146_v14  ;;  %v170_v22 = vld [vmem:[%s3710_s3 + $0xd8] sm:$0xff]  ;;  %v171_v23 = vld [vmem:[%s3710_s3 + $0xe0] sm:$0xff]  ;;  %v149_v24 = vld [vmem:[%s3710_s3 + $0x30] sm:$0xff]  ;;  %p3569_p0 = scmp.lt.s32.totalorder %s5033_s30, %s3567_s14 }
  0x1e   : > { %v332_v25 = vshrl.u32 %v3722_v12, 16  ;;  %v334_v26 = vshll.u32 %v3722_v12, 16  ;;  %v339_v27 = vshll.u32 %v3724_v13, 16  ;;  %v3743_v28 = vpack.c.bf16 %v148_v16, %v148_v16  ;;  %v172_v29 = vld [vmem:[%s3710_s3 + $0xe8] sm:$0x3]  ;;  %v150_v30 = vld [vmem:[%s3710_s3 + $0x38] sm:$0xff]  ;;  %p3564_p12 = pnand %p3563_p11, %p3681_p5 }
  0x1f   : > { %v240_v31 = vrot.slane %v238_v19, 1  ;;  %v245_v32 = vrot.slane %v243_v20, 1  ;;  %v248_v33 = vshrl.u32 %v3735_v21, 16  ;;  %v250_v34 = vshll.u32 %v3735_v21, 16  ;;  %v151_v35 = vld [vmem:[%s3710_s3 + $0x40] sm:$0x3] }
  0x20   : > { %v336_v36 = vrot.slane %v334_v26, 1  ;;  %v341_v37 = vrot.slane %v339_v27, 1  ;;  %v255_v38 = vshll.u32 %v3743_v28, 16  ;;  %v3752_v42 = vpack.c.bf16 %v171_v23, %v170_v22  ;;  %v173_v48 = vld [vmem:[%s3710_s3 + $0xf0] sm:$0xff]  ;;  %v174_v49 = vld [vmem:[%s3710_s3 + $0xf8] sm:$0xff]  ;;  %v152_v55 = vld [vmem:[%s3710_s3 + $0x48] sm:$0xff]  ;;  %p3565_p13 = pneg %p3564_p12 }
  0x21   : > { %v241_v40 = vor.u32 %v240_v31, %v236_v18  ;;  %v252_v41 = vrot.slane %v250_v34, 1  ;;  %v3754_v43 = vpack.c.bf16 %v172_v29, %v172_v29  ;;  %v3756_v46 = vpack.c.bf16 %v150_v30, %v149_v24  ;;  %v175_v54 = vld [vmem:[%s3710_s3 + $0x100] sm:$0x3]  ;;  %v153_v56 = vld [vmem:[%s3710_s3 + $0x50] sm:$0xff]  ;;  %v154_v1 = vld [vmem:[%s3710_s3 + $0x58] sm:$0x3] }
  0x22   : > { %v337_v44 = vor.u32 %v336_v36, %v332_v25  ;;  %v257_v45 = vrot.slane %v255_v38, 1  ;;  %v3758_v47 = vpack.c.bf16 %v151_v35, %v151_v35  ;;  %v344_v52 = vshrl.u32 %v3752_v42, 16  ;;  %v176_v9 = vld [vmem:[%s3710_s3 + $0x108] sm:$0xff]  ;;  %v177_v10 = vld [vmem:[%s3710_s3 + $0x110] sm:$0xff]  ;;  %v178_v18 = vld [vmem:[%s3710_s3 + $0x118] sm:$0x3] }
  0x23   : > { %v246_v50 = vsel %vm234_vm1, %v241_v40, %v245_v32  ;;  %v253_v51 = vor.u32 %v252_v41, %v248_v33  ;;  %v346_v53 = vshll.u32 %v3752_v42, 16  ;;  %v351_v58 = vshll.u32 %v3754_v43, 16  ;;  %v3807_v24 = vld [vmem:[%s5084_s1 + $0x6] sm:$0x3]  ;;  %v156_v31 = vld [vmem:[%s3710_s3 + $0x68] sm:$0xff]  ;;  %s3568_s16 = scalar_lea.vmem %s3567_s14, 8192 }
  0x24   : > { %3155 = vmatprep.mubr.msk.bf16.mxu0 %vm429_vm2, %v246_v50  ;;  %v3770_v57 = vsel %vm234_vm1, %v337_v44, %v341_v37  ;;  %v260_v59 = vshrl.u32 %v3756_v46, 16  ;;  %v262_v60 = vshll.u32 %v3756_v46, 16  ;;  %v267_v63 = vshll.u32 %v3758_v47, 16  ;;  %v155_v30 = vld [vmem:[%s3710_s3 + $0x60] sm:$0xff]  ;;  %v157_v32 = vld [vmem:[%s3710_s3 + $0x70] sm:$0x3]  ;;  %p3570_p1 = scmp.lt.s32.totalorder %s3568_s16, %s3562_s7 }
  0x25   : > { %3171 = vmatprep.mubr.msk.bf16.mxu1 %vm429_vm2, %v3770_v57  ;;  %v3778_v61 = vsel %vm234_vm1, %v253_v51, %v257_v45  ;;  %v348_v62 = vrot.slane %v346_v53, 1  ;;  %v3781_v0 = vpack.c.bf16 %v174_v49, %v173_v48  ;;  %v353_v3 = vrot.slane %v351_v58, 1  ;;  %v179_v37 = vld [vmem:[%s3710_s3 + $0x120] sm:$0xff]  ;;  %v180_v38 = vld [vmem:[%s3710_s3 + $0x128] sm:$0xff] }
  0x26   : > { %3156 = vmatmul.mubr.msk.bf16.vlgmr.msra.gmra.mxu0 %vm429_vm2, %v3778_v61  ;;  %v264_v4 = vrot.slane %v262_v60, 1  ;;  %v3791_v5 = vpack.c.bf16 %v175_v54, %v175_v54  ;;  %v3793_v6 = vpack.c.bf16 %v153_v56, %v152_v55  ;;  %v269_v14 = vrot.slane %v267_v63, 1  ;;  %v158_v55 = vld [vmem:[%s3710_s3 + $0x78] sm:$0xff]  ;;  %v159_v56 = vld [vmem:[%s3710_s3 + $0x80] sm:$0xff]  ;;  %v160_v58 = vld [vmem:[%s3710_s3 + $0x88] sm:$0x3]  ;;  %p3571_p2 = por %p3570_p1, %p3569_p0 }
  0x27   : > { %v349_v11 = vor.u32 %v348_v62, %v344_v52  ;;  %3222 = vmatpush3.bf16.msra.mxu0 %v971_v39  ;;  %v356_v15 = vshrl.u32 %v3781_v0, 16  ;;  %v358_v16 = vshll.u32 %v3781_v0, 16  ;;  %v3801_v22 = vpack.c.bf16 %v154_v1, %v154_v1  ;;  %v182_v1 = vld [vmem:[%s3710_s3 + $0x138] sm:$0xff] }
  0x28   : > { %v265_v19 = vor.u32 %v264_v4, %v260_v59  ;;  %v363_v20 = vshll.u32 %v3791_v5, 16  ;;  %v272_v23 = vshrl.u32 %v3793_v6, 16  ;;  %3466 = vmatprep.subr.msk.bf16.mxu0 %vm478_vm0, %v3787_v2  ;;  %v274_v27 = vshll.u32 %v3793_v6, 16  ;;  %p3572_p3 = pnand %p3571_p2, %p3565_p13 }
  0x29   : > { %v3812_v25 = vsel %vm234_vm1, %v349_v11, %v353_v3  ;;  %v360_v26 = vrot.slane %v358_v16, 1  ;;  %v3815_v29 = vpack.c.bf16 %v177_v10, %v176_v9  ;;  %v279_v35 = vshll.u32 %v3801_v22, 16  ;;  %v183_v3 = vld [vmem:[%s3710_s3 + $0x140] sm:$0xff] }
  0x2a   : > { %3172 = vmatmul.mubr.msk.bf16.vlgmr.msra.gmra.mxu1 %vm429_vm2, %v3812_v25  ;;  %v3823_v33 = vsel %vm234_vm1, %v265_v19, %v269_v14  ;;  %v365_v34 = vrot.slane %v363_v20, 1  ;;  %v3826_v36 = vpack.c.bf16 %v178_v18, %v178_v18  ;;  %v276_v40 = vrot.slane %v274_v27, 1  ;;  %v184_v19 = vld [vmem:[%s3710_s3 + $0x148] sm:$0x3] }
  0x2b   : > { %3188 = vmatpush3.bf16.msra.mxu1 %v3730_v17  ;;  %3159 = vmatprep.mubr.msk.bf16.mxu0 %vm429_vm2, %v3823_v33  ;;  %v361_v39 = vor.u32 %v360_v26, %v356_v15  ;;  %v368_v41 = vshrl.u32 %v3815_v29, 16  ;;  %v370_v44 = vshll.u32 %v3815_v29, 16  ;;  %v281_v45 = vrot.slane %v279_v35, 1  ;;  %v181_v17 = vld [vmem:[%s3710_s3 + $0x130] sm:$0x3] }
  0x2c   : > { %v375_v48 = vshll.u32 %v3826_v36, 16  ;;  %v3836_v49 = vpack.c.bf16 %v156_v31, %v155_v30  ;;  %v3838_v50 = vpack.c.bf16 %v157_v32, %v157_v32  ;;  %3465 = vmatprep.subr.msk.bf16.mxu1 %vm478_vm0, %v3807_v24  ;;  %v277_v52 = vor.u32 %v276_v40, %v272_v23  ;;  %v161_v30 = vld [vmem:[%s3710_s3 + $0x90] sm:$0xff] }
  0x2d   : > { %v3844_v51 = vsel %vm234_vm1, %v361_v39, %v365_v34  ;;  %v372_v53 = vrot.slane %v370_v44, 1  ;;  %v3846_v54 = vpack.c.bf16 %v180_v38, %v179_v37  ;;  %v3861_v10 = vpack.c.bf16 %v181_v17, %v181_v17  ;;  %v162_v37 = vld [vmem:[%s3710_s3 + $0x98] sm:$0xff]  ;;  %v163_v38 = vld [vmem:[%s3710_s3 + $0xa0] sm:$0x3] }
  0x2e   : > { %3175 = vmatprep.mubr.msk.bf16.mxu1 %vm429_vm2, %v3844_v51  ;;  %v377_v59 = vrot.slane %v375_v48, 1  ;;  %v284_v60 = vshrl.u32 %v3836_v49, 16  ;;  %v286_v62 = vshll.u32 %v3836_v49, 16  ;;  %v291_v63 = vshll.u32 %v3838_v50, 16  ;;  %v186_v48 = vld [vmem:[%s3710_s3 + $0x158] sm:$0xff] }
  0x2f   : > { %v3859_v4 = vsel %vm234_vm1, %v277_v52, %v281_v45  ;;  %v373_v9 = vor.u32 %v372_v53, %v368_v41  ;;  %v380_v11 = vshrl.u32 %v3846_v54, 16  ;;  %v382_v16 = vshll.u32 %v3846_v54, 16  ;;  %v185_v45 = vld [vmem:[%s3710_s3 + $0x150] sm:$0xff] }
  0x30   : > { %3160 = vmatmul.mubr.msk.bf16.gmra.mxu0 %vm429_vm2, %v3859_v4  ;;  %v288_v14 = vrot.slane %v286_v62, 1  ;;  %v293_v15 = vrot.slane %v291_v63, 1  ;;  %v3867_v18 = vpack.c.bf16 %v159_v56, %v158_v55  ;;  %v387_v23 = vshll.u32 %v3861_v10, 16  ;;  %v187_v62 = vld [vmem:[%s3710_s3 + $0x160] sm:$0x3] }
  0x31   : > { %v3871_v20 = vsel %vm234_vm1, %v373_v9, %v377_v59  ;;  %v3874_v26 = vpack.c.bf16 %v160_v58, %v160_v58  ;;  %v3876_v27 = vpack.c.bf16 %v183_v3, %v182_v1  ;;  %v384_v32 = vrot.slane %v382_v16, 1 }
  0x32   : > { %3176 = vmatmul.mubr.msk.bf16.gmra.mxu1 %vm429_vm2, %v3871_v20  ;;  %v289_v31 = vor.u32 %v288_v14, %v284_v60  ;;  %v296_v34 = vshrl.u32 %v3867_v18, 16  ;;  %v298_v35 = vshll.u32 %v3867_v18, 16  ;;  %v389_v39 = vrot.slane %v387_v23, 1  ;;  %v165_v14 = vld [vmem:[%s3710_s3 + $0xb0] sm:$0xff] }
  0x33   : > { %v303_v40 = vshll.u32 %v3874_v26, 16  ;;  %v3886_v41 = vpack.c.bf16 %v184_v19, %v184_v19  ;;  %v392_v44 = vshrl.u32 %v3876_v27, 16  ;;  %v385_v52 = vor.u32 %v384_v32, %v380_v11  ;;  %v164_v11 = vld [vmem:[%s3710_s3 + $0xa8] sm:$0xff]  ;;  %v189_v32 = vld [vmem:[%s3710_s3 + $0x170] sm:$0xff] }
  0x34   : > { %v3892_v17 = vsel %vm234_vm1, %v289_v31, %v293_v15  ;;  %v300_v53 = vrot.slane %v298_v35, 1  ;;  %v394_v55 = vshll.u32 %v3876_v27, 16  ;;  %v3898_v59 = vpack.c.bf16 %v162_v37, %v161_v30  ;;  %v166_v15 = vld [vmem:[%s3710_s3 + $0xb8] sm:$0x3]  ;;  %v188_v31 = vld [vmem:[%s3710_s3 + $0x168] sm:$0xff] }
  0x35   : > { %3163 = vmatprep.mubr.msk.bf16.mxu0 %vm429_vm2, %v3892_v17  ;;  %v305_v56 = vrot.slane %v303_v40, 1  ;;  %v399_v58 = vshll.u32 %v3886_v41, 16  ;;  %v3900_v60 = vpack.c.bf16 %v163_v38, %v163_v38  ;;  %v3904_v63 = vsel %vm234_vm1, %v385_v52, %v389_v39  ;;  %v190_v52 = vld [vmem:[%s3710_s3 + $0x178] sm:$0x3] }
  0x36   : > { %v301_v1 = vor.u32 %v300_v53, %v296_v34  ;;  %v396_v3 = vrot.slane %v394_v55, 1  ;;  %v3906_v9 = vpack.c.bf16 %v186_v48, %v185_v45  ;;  %3179 = vmatprep.mubr.msk.bf16.mxu1 %vm429_vm2, %v3904_v63  ;;  %v308_v19 = vshrl.u32 %v3898_v59, 16 }
  0x37   : > { %v401_v16 = vrot.slane %v399_v58, 1  ;;  %v310_v23 = vshll.u32 %v3898_v59, 16  ;;  %v315_v30 = vshll.u32 %v3900_v60, 16  ;;  %v3921_v37 = vpack.c.bf16 %v187_v62, %v187_v62 }
  0x38   : > { %v3919_v34 = vsel %vm234_vm1, %v301_v1, %v305_v56  ;;  %v397_v35 = vor.u32 %v396_v3, %v392_v44  ;;  %v404_v38 = vshrl.u32 %v3906_v9, 16  ;;  %v406_v45 = vshll.u32 %v3906_v9, 16 }
  0x39   : > { %3164 = vmatmul.mubr.msk.bf16.gmra.mxu0 %vm429_vm2, %v3919_v34  ;;  %v312_v39 = vrot.slane %v310_v23, 1  ;;  %v317_v40 = vrot.slane %v315_v30, 1  ;;  %v3927_v48 = vpack.c.bf16 %v165_v14, %v164_v11  ;;  %v411_v55 = vshll.u32 %v3921_v37, 16 }
  0x3a   : > { %v3931_v53 = vsel %vm234_vm1, %v397_v35, %v401_v16  ;;  %v3934_v44 = vpack.c.bf16 %v166_v15, %v166_v15  ;;  %v3936_v56 = vpack.c.bf16 %v189_v32, %v188_v31  ;;  %v408_v62 = vrot.slane %v406_v45, 1 }
  0x3b   : > { %3180 = vmatmul.mubr.msk.bf16.gmra.mxu1 %vm429_vm2, %v3931_v53  ;;  %v313_v58 = vor.u32 %v312_v39, %v308_v19  ;;  %v320_v1 = vshrl.u32 %v3927_v48, 16  ;;  %v322_v3 = vshll.u32 %v3927_v48, 16  ;;  %v413_v11 = vrot.slane %v411_v55, 1 }
  0x3c   : > { %v327_v14 = vshll.u32 %v3934_v44, 16  ;;  %v3943_v16 = vpack.c.bf16 %v190_v52, %v190_v52  ;;  %v416_v23 = vshrl.u32 %v3936_v56, 16  ;;  %v409_v30 = vor.u32 %v408_v62, %v404_v38 }
  0x3d   : > { %v3947_v15 = vsel %vm234_vm1, %v313_v58, %v317_v40  ;;  %v324_v31 = vrot.slane %v322_v3, 1  ;;  %v418_v32 = vshll.u32 %v3936_v56, 16  ;;  %v872_v39 = vrot.slane %v3715_v7, 1 }
  0x3e   : > { %3167 = vmatprep.mubr.msk.bf16.mxu0 %vm429_vm2, %v3947_v15  ;;  %v329_v19 = vrot.slane %v327_v14, 1  ;;  %v423_v35 = vshll.u32 %v3943_v16, 16  ;;  %v873_v45 = vrot.slane %v3717_v8, 1  ;;  %v3956_v52 = vsel %vm234_vm1, %v409_v30, %v413_v11 }
  0x3f   : > { %v325_v55 = vor.u32 %v324_v31, %v320_v1  ;;  %v420_v40 = vrot.slane %v418_v32, 1  ;;  %3183 = vmatprep.mubr.msk.bf16.mxu1 %vm429_vm2, %v3956_v52  ;;  %v876_v8 = vrot.slane %v3743_v28, 1  ;;  %v875_v1 = vrot.slane %v3735_v21, 1  ;;  %v3989_v32 = vld [vmem:[%s5084_s1 + $0xc] sm:$0x3] }
  0x40   : > { %v425_v38 = vrot.slane %v423_v35, 1  ;;  %v874_v58 = vsel %vm871_vm3, %v872_v39, %v873_v45  ;;  %v878_v14 = vrot.slane %v3756_v46, 1  ;;  %v879_v30 = vrot.slane %v3758_v47, 1 }
  0x41   : > { %v3962_v62 = vsel %vm234_vm1, %v325_v55, %v329_v19  ;;  %v421_v3 = vor.u32 %v420_v40, %v416_v23  ;;  %v3979_v23 = vsel %vm871_vm3, %v875_v1, %v876_v8  ;;  %v1384_v28 = vsel %vm478_vm0, %v3787_v2, 0  ;;  %v4002_v19 = vld [vmem:[%s5084_s1 + $0xa] sm:$0x3] }
  0x42   : > { %3168 = vmatmul.mubr.msk.bf16.gmra.mxu0 %vm429_vm2, %v3962_v62  ;;  %v3984_v31 = vsel %vm871_vm3, %v878_v14, %v879_v30  ;;  %v881_v47 = vrot.slane %v3793_v6, 1  ;;  %v882_v2 = vrot.slane %v3801_v22, 1  ;;  %v884_v35 = vrot.slane %v3836_v49, 1 }
  0x43   : > { %v3968_v11 = vsel %vm234_vm1, %v421_v3, %v425_v38  ;;  %3223 = vmatprep.mubr.msk.bf16.mxu0 %vm429_vm2, %v874_v58  ;;  %v888_v45 = vrot.slane %v3874_v26, 1  ;;  %v890_v55 = vrot.slane %v3898_v59, 1  ;;  %v891_v40 = vrot.slane %v3900_v60, 1 }
  0x44   : > { %3184 = vmatmul.mubr.msk.bf16.gmra.mxu1 %vm429_vm2, %v3968_v11  ;;  %v4015_v22 = vsel %vm871_vm3, %v881_v47, %v882_v2  ;;  %v893_v26 = vrot.slane %v3927_v48, 1  ;;  %v894_v3 = vrot.slane %v3934_v44, 1  ;;  %v896_v60 = vrot.slane %v3722_v12, 1 }
  0x45   : > { %3189 = vmatprep.mubr.msk.bf16.mxu1 %vm429_vm2, %v3715_v7  ;;  %v1172_v7 = vsel %vm478_vm0, %v3807_v24, 0  ;;  %v885_v24 = vrot.slane %v3838_v50, 1  ;;  %v887_v50 = vrot.slane %v3867_v18, 1  ;;  %v4036_v58 = vsel %vm871_vm3, %v890_v55, %v891_v40 }
  0x46   : > { %v897_v8 = vrot.slane %v3724_v13, 1  ;;  %v4051_v1 = vsel %vm871_vm3, %v893_v26, %v894_v3  ;;  %v899_v44 = vrot.slane %v3752_v42, 1  ;;  %v900_v30 = vrot.slane %v3754_v43, 1 }
  0x47   : > { %v4018_v39 = vsel %vm871_vm3, %v884_v35, %v885_v24  ;;  %v4033_v38 = vsel %vm871_vm3, %v887_v50, %v888_v45  ;;  %v902_v13 = vrot.slane %v3781_v0, 1  ;;  %v905_v43 = vrot.slane %v3815_v29, 1 }
  0x48   : > { %v4054_v14 = vsel %vm871_vm3, %v896_v60, %v897_v8  ;;  %v906_v2 = vrot.slane %v3826_v36, 1  ;;  %v909_v35 = vrot.slane %v3861_v10, 1  ;;  %v911_v36 = vrot.slane %v3876_v27, 1  ;;  %v2977_v60 = vld [vmem:[%s5084_s1 + $0x10] sm:$0x3] }
  0x49   : > { %v912_v45 = vrot.slane %v3886_v41, 1  ;;  %v914_v10 = vrot.slane %v3906_v9, 1  ;;  %v915_v55 = vrot.slane %v3921_v37, 1  ;;  %v917_v41 = vrot.slane %v3936_v56, 1 }
  0x4a   : > { %3224 = vmatmul.mubr.msk.bf16.vlgmr.msra.gmra.mxu0 %vm429_vm2, %v3979_v23  ;;  %v4087_v24 = vsel %vm871_vm3, %v905_v43, %v906_v2  ;;  %v918_v3 = vrot.slane %v3943_v16, 1  ;;  %v1791_v16 = vsel %vm478_vm0, %v3989_v32, 0  ;;  %v1590_v8 = vsel %vm478_vm0, %v4002_v19, 0 }
  0x4b   : > { %3290 = vmatpush3.bf16.msra.mxu0 %v1384_v28  ;;  %3227 = vmatprep.mubr.msk.bf16.mxu0 %vm429_vm2, %v3984_v31  ;;  %v903_v28 = vrot.slane %v3791_v5, 1  ;;  %v908_v5 = vrot.slane %v3846_v54, 1  ;;  %v4105_v40 = vsel %vm871_vm3, %v911_v36, %v912_v45  ;;  %v4108_v26 = vsel %vm871_vm3, %v914_v10, %v915_v55 }
  0x4c   : > { %3190 = vmatmul.mubr.msk.bf16.vlgmr.msra.gmra.mxu1 %vm429_vm2, %v3735_v21  ;;  %3468 = vmatprep.subr.msk.bf16.mxu0 %vm478_vm0, %v3989_v32  ;;  %v4121_v37 = vsel %vm871_vm3, %v917_v41, %v918_v3  ;;  %v192_v32 = vld [vmem:[%s3710_s3 + $0x188] sm:$0xff]  ;;  %v2209_v45 = vsel %vm478_vm0, %v2977_v60, 0 }
  0x4d   : > { %3256 = vmatpush3.bf16.msra.mxu1 %v1172_v7  ;;  %3193 = vmatprep.mubr.msk.bf16.mxu1 %vm429_vm2, %v3756_v46  ;;  %v4069_v7 = vsel %vm871_vm3, %v899_v44, %v900_v30  ;;  %v4072_v47 = vsel %vm871_vm3, %v902_v13, %v903_v28  ;;  %v4090_v50 = vsel %vm871_vm3, %v908_v5, %v909_v35  ;;  %v193_v44 = vld [vmem:[%s3710_s3 + $0x190] sm:$0x3] }
  0x4e   : > { %3467 = vmatprep.subr.msk.bf16.mxu1 %vm478_vm0, %v4002_v19  ;;  %v4192_v30 = vpack.c.bf16 %v193_v44, %v193_v44 }
  0x50   : > { %v1374_v2 = vshll.u32 %v4192_v30, 16  ;;  %v1582_v44 = vrot.slane %v4192_v30, 1 }
  0x52   : > { %3228 = vmatmul.mubr.msk.bf16.gmra.mxu0 %vm429_vm2, %v4015_v22  ;;  %v1376_v35 = vrot.slane %v1374_v2, 1 }
  0x53   : > { %3231 = vmatprep.mubr.msk.bf16.mxu0 %vm429_vm2, %v4018_v39 }
  0x54   : > { %3194 = vmatmul.mubr.msk.bf16.gmra.mxu1 %vm429_vm2, %v3793_v6 }
  0x55   : > { %3197 = vmatprep.mubr.msk.bf16.mxu1 %vm429_vm2, %v3836_v49 }
  0x5a   : > { %3232 = vmatmul.mubr.msk.bf16.gmra.mxu0 %vm429_vm2, %v4033_v38 }
  0x5b   : > { %3235 = vmatprep.mubr.msk.bf16.mxu0 %vm429_vm2, %v4036_v58 }
  0x5c   : > { %3198 = vmatmul.mubr.msk.bf16.gmra.mxu1 %vm429_vm2, %v3867_v18 }
  0x5d   : > { %3201 = vmatprep.mubr.msk.bf16.mxu1 %vm429_vm2, %v3898_v59 }
  0x62   : > { %3236 = vmatmul.mubr.msk.bf16.gmra.mxu0 %vm429_vm2, %v4051_v1 }
  0x63   : > { %3239 = vmatprep.mubr.msk.bf16.mxu0 %vm429_vm2, %v4054_v14 }
  0x64   : > { %3202 = vmatmul.mubr.msk.bf16.gmra.mxu1 %vm429_vm2, %v3927_v48 }
  0x65   : > { %3205 = vmatprep.mubr.msk.bf16.mxu1 %vm429_vm2, %v3722_v12 }
  0x6a   : > { %3240 = vmatmul.mubr.msk.bf16.gmra.mxu0 %vm429_vm2, %v4069_v7 }
  0x6b   : > { %3243 = vmatprep.mubr.msk.bf16.mxu0 %vm429_vm2, %v4072_v47 }
  0x6c   : > { %3206 = vmatmul.mubr.msk.bf16.gmra.mxu1 %vm429_vm2, %v3752_v42 }
  0x6d   : > { %3209 = vmatprep.mubr.msk.bf16.mxu1 %vm429_vm2, %v3781_v0 }
  0x72   : > { %3244 = vmatmul.mubr.msk.bf16.gmra.mxu0 %vm429_vm2, %v4087_v24 }
  0x73   : > { %3247 = vmatprep.mubr.msk.bf16.mxu0 %vm429_vm2, %v4090_v50 }
  0x74   : > { %3210 = vmatmul.mubr.msk.bf16.gmra.mxu1 %vm429_vm2, %v3815_v29 }
  0x75   : > { %3213 = vmatprep.mubr.msk.bf16.mxu1 %vm429_vm2, %v3846_v54 }
  0x7a   : > { %3248 = vmatmul.mubr.msk.bf16.gmra.mxu0 %vm429_vm2, %v4105_v40 }
  0x7b   : > { %3251 = vmatprep.mubr.msk.bf16.mxu0 %vm429_vm2, %v4108_v26 }
  0x7c   : > { %3214 = vmatmul.mubr.msk.bf16.gmra.mxu1 %vm429_vm2, %v3876_v27 }
  0x7d   : > { %3217 = vmatprep.mubr.msk.bf16.mxu1 %vm429_vm2, %v3906_v9 }
  0x82   : > { %3252 = vmatmul.mubr.msk.bf16.gmra.mxu0 %vm429_vm2, %v4121_v37 }
  0x83   : > { %3291 = vmatprep.mubr.msk.bf16.mxu0 %vm429_vm2, %v3778_v61  ;;  %v191_v61 = vld [vmem:[%s3710_s3 + $0x180] sm:$0xff] }
  0x84   : > { %3218 = vmatmul.mubr.msk.bf16.gmra.mxu1 %vm429_vm2, %v3936_v56  ;;  %v4185_v19 = vpack.c.bf16 %v192_v32, %v191_v61 }
  0x85   : > { %3257 = vmatprep.mubr.msk.bf16.mxu1 %vm429_vm2, %v3735_v21  ;;  %v2960_v21 = vld [vmem:[%s5084_s1 + $0xe] sm:$0x3] }
  0x86   : > { %v1369_v13 = vshll.u32 %v4185_v19, 16  ;;  %v1367_v28 = vshrl.u32 %v4185_v19, 16  ;;  %v2003_v10 = vsel %vm478_vm0, %v2960_v21, 0 }
  0x88   : > { %v1371_v43 = vrot.slane %v1369_v13, 1 }
  0x8a   : > { %3292 = vmatmul.mubr.msk.bf16.vlgmr.msra.gmra.mxu0 %vm429_vm2, %v3823_v33  ;;  %v1372_v5 = vor.u32 %v1371_v43, %v1367_v28 }
  0x8b   : > { %3358 = vmatpush3.bf16.msra.mxu0 %v1791_v16  ;;  %3295 = vmatprep.mubr.msk.bf16.mxu0 %vm429_vm2, %v3859_v4 }
  0x8c   : > { %3258 = vmatmul.mubr.msk.bf16.vlgmr.msra.gmra.mxu1 %vm429_vm2, %v3756_v46  ;;  %3470 = vmatprep.subr.msk.bf16.mxu0 %vm478_vm0, %v2977_v60  ;;  %v4210_v36 = vsel %vm234_vm1, %v1372_v5, %v1376_v35 }
  0x8d   : > { %3324 = vmatpush3.bf16.msra.mxu1 %v1590_v8  ;;  %3261 = vmatprep.mubr.msk.bf16.mxu1 %vm429_vm2, %v3793_v6  ;;  %5089 = vst [vmem:[#allocation5_spill] sm:$0xff] %v4210_v36  ;;  %v194_v8 = vld [vmem:[%s3710_s3 + $0x198] sm:$0xff] }
  0x8e   : > { %3469 = vmatprep.subr.msk.bf16.mxu1 %vm478_vm0, %v2960_v21  ;;  %v195_v21 = vld [vmem:[%s3710_s3 + $0x1a0] sm:$0xff] }
  0x8f   : > { %v4322_v13 = vpack.c.bf16 %v195_v21, %v194_v8 }
  0x92   : > { %3296 = vmatmul.mubr.msk.bf16.gmra.mxu0 %vm429_vm2, %v3892_v17 }
  0x93   : > { %3299 = vmatprep.mubr.msk.bf16.mxu0 %vm429_vm2, %v3919_v34 }
  0x94   : > { %3262 = vmatmul.mubr.msk.bf16.gmra.mxu1 %vm429_vm2, %v3836_v49 }
  0x95   : > { %3265 = vmatprep.mubr.msk.bf16.mxu1 %vm429_vm2, %v3867_v18 }
  0x9a   : > { %3300 = vmatmul.mubr.msk.bf16.gmra.mxu0 %vm429_vm2, %v3947_v15 }
  0x9b   : > { %3303 = vmatprep.mubr.msk.bf16.mxu0 %vm429_vm2, %v3962_v62 }
  0x9c   : > { %3266 = vmatmul.mubr.msk.bf16.gmra.mxu1 %vm429_vm2, %v3898_v59 }
  0x9d   : > { %3269 = vmatprep.mubr.msk.bf16.mxu1 %vm429_vm2, %v3927_v48 }
  0xa2   : > { %3304 = vmatmul.mubr.msk.bf16.gmra.mxu0 %vm429_vm2, %v3770_v57 }
  0xa3   : > { %3307 = vmatprep.mubr.msk.bf16.mxu0 %vm429_vm2, %v3812_v25 }
  0xa4   : > { %3270 = vmatmul.mubr.msk.bf16.gmra.mxu1 %vm429_vm2, %v3722_v12 }
  0xa5   : > { %3273 = vmatprep.mubr.msk.bf16.mxu1 %vm429_vm2, %v3752_v42 }
  0xaa   : > { %3308 = vmatmul.mubr.msk.bf16.gmra.mxu0 %vm429_vm2, %v3844_v51 }
  0xab   : > { %3311 = vmatprep.mubr.msk.bf16.mxu0 %vm429_vm2, %v3871_v20 }
  0xac   : > { %3274 = vmatmul.mubr.msk.bf16.gmra.mxu1 %vm429_vm2, %v3781_v0 }
  0xad   : > { %3277 = vmatprep.mubr.msk.bf16.mxu1 %vm429_vm2, %v3815_v29 }
  0xb2   : > { %3312 = vmatmul.mubr.msk.bf16.gmra.mxu0 %vm429_vm2, %v3904_v63 }
  0xb3   : > { %3315 = vmatprep.mubr.msk.bf16.mxu0 %vm429_vm2, %v3931_v53 }
  0xb4   : > { %3278 = vmatmul.mubr.msk.bf16.gmra.mxu1 %vm429_vm2, %v3846_v54 }
  0xb5   : > { %3281 = vmatprep.mubr.msk.bf16.mxu1 %vm429_vm2, %v3876_v27 }
  0xba   : > { %3316 = vmatmul.mubr.msk.bf16.gmra.mxu0 %vm429_vm2, %v3956_v52 }
  0xbb   : > { %3319 = vmatprep.mubr.msk.bf16.mxu0 %vm429_vm2, %v3968_v11 }
  0xbc   : > { %3282 = vmatmul.mubr.msk.bf16.gmra.mxu1 %vm429_vm2, %v3906_v9 }
  0xbd   : > { %3285 = vmatprep.mubr.msk.bf16.mxu1 %vm429_vm2, %v3936_v56 }
  0xc2   : > { %3320 = vmatmul.mubr.msk.bf16.gmra.mxu0 %vm429_vm2, %v4210_v36 }
  0xc3   : > { %3359 = vmatprep.mubr.msk.bf16.mxu0 %vm429_vm2, %v3756_v46 }
  0xc4   : > { %3286 = vmatmul.mubr.msk.bf16.gmra.mxu1 %vm429_vm2, %v4185_v19 }
  0xc5   : > { %3325 = vmatprep.mubr.msk.bf16.mxu1 %vm429_vm2, %v3979_v23 }
  0xca   : > { %3360 = vmatmul.mubr.msk.bf16.vlgmr.msra.gmra.mxu0 %vm429_vm2, %v3793_v6 }
  0xcb   : > { %3426 = vmatpush3.bf16.msra.mxu0 %v2209_v45  ;;  %3363 = vmatprep.mubr.msk.bf16.mxu0 %vm429_vm2, %v3836_v49 }
  0xcc   : > { %3326 = vmatmul.mubr.msk.bf16.vlgmr.msra.gmra.mxu1 %vm429_vm2, %v3984_v31 }
  0xcd   : > { %3392 = vmatpush3.bf16.msra.mxu1 %v2003_v10  ;;  %3329 = vmatprep.mubr.msk.bf16.mxu1 %vm429_vm2, %v4015_v22 }
  0xd2   : > { %3364 = vmatmul.mubr.msk.bf16.gmra.mxu0 %vm429_vm2, %v3867_v18 }
  0xd3   : > { %3367 = vmatprep.mubr.msk.bf16.mxu0 %vm429_vm2, %v3898_v59 }
  0xd4   : > { %3330 = vmatmul.mubr.msk.bf16.gmra.mxu1 %vm429_vm2, %v4018_v39 }
  0xd5   : > { %3333 = vmatprep.mubr.msk.bf16.mxu1 %vm429_vm2, %v4033_v38 }
  0xda   : > { %3368 = vmatmul.mubr.msk.bf16.gmra.mxu0 %vm429_vm2, %v3927_v48 }
  0xdb   : > { %3371 = vmatprep.mubr.msk.bf16.mxu0 %vm429_vm2, %v3722_v12 }
  0xdc   : > { %3334 = vmatmul.mubr.msk.bf16.gmra.mxu1 %vm429_vm2, %v4036_v58 }
  0xdd   : > { %3337 = vmatprep.mubr.msk.bf16.mxu1 %vm429_vm2, %v4051_v1 }
  0xe2   : > { %3372 = vmatmul.mubr.msk.bf16.gmra.mxu0 %vm429_vm2, %v3752_v42 }
  0xe3   : > { %3375 = vmatprep.mubr.msk.bf16.mxu0 %vm429_vm2, %v3781_v0 }
  0xe4   : > { %3338 = vmatmul.mubr.msk.bf16.gmra.mxu1 %vm429_vm2, %v4054_v14 }
  0xe5   : > { %3341 = vmatprep.mubr.msk.bf16.mxu1 %vm429_vm2, %v4069_v7 }
  0xe6   : > { %v3157_v46 = vpop.f32.mrf.mxu0 }
  0xe8   : > { %v4254_v12 = vpop.f32.mrf.mxu0 }
  0xea   : > { %v4256_v6 = vpop.f32.mrf.mxu1  ;;  %3376 = vmatmul.mubr.msk.bf16.gmra.mxu0 %vm429_vm2, %v3815_v29  ;;  %v4260_v49 = vpop.f32.mrf.mxu0 }
  0xeb   : > { %3379 = vmatprep.mubr.msk.bf16.mxu0 %vm429_vm2, %v3846_v54 }
  0xec   : > { %3342 = vmatmul.mubr.msk.bf16.gmra.mxu1 %vm429_vm2, %v4072_v47  ;;  %v4266_v42 = vpop.f32.mrf.mxu1  ;;  %v4268_v0 = vpop.f32.mrf.mxu0 }
  0xed   : > { %3345 = vmatprep.mubr.msk.bf16.mxu1 %vm429_vm2, %v4087_v24 }
  0xee   : > { %v4272_v18 = vpop.f32.mrf.mxu1 }
  0xf0   : > { %v4274_v59 = vpop.f32.mrf.mxu1  ;;  %v4276_v29 = vpop.f32.mrf.mxu0 }
  0xf2   : > { %v4278_v48 = vpop.f32.mrf.mxu1  ;;  %3380 = vmatmul.mubr.msk.bf16.gmra.mxu0 %vm429_vm2, %v3876_v27  ;;  %v4282_v54 = vpop.f32.mrf.mxu0 }
  0xf3   : > { %3383 = vmatprep.mubr.msk.bf16.mxu0 %vm429_vm2, %v3906_v9 }
  0xf4   : > { %3346 = vmatmul.mubr.msk.bf16.gmra.mxu1 %vm429_vm2, %v4090_v50  ;;  %v4288_v23 = vpop.f32.mrf.mxu1  ;;  %v4290_v55 = vpop.f32.mrf.mxu0 }
  0xf5   : > { %3349 = vmatprep.mubr.msk.bf16.mxu1 %vm429_vm2, %v4105_v40 }
  0xf6   : > { %v4294_v41 = vpop.f32.mrf.mxu1  ;;  %v4296_v3 = vpop.f32.mrf.mxu0 }
  0xf8   : > { %v4298_v27 = vpop.f32.mrf.mxu1 }
  0xf9   : > { %v4300_v16 = vpop.f32.mrf.mxu0 }
  0xfa   : > { %3384 = vmatmul.mubr.msk.bf16.gmra.mxu0 %vm429_vm2, %v3936_v56  ;;  %v1581_v56 = vrot.slane %v4185_v19, 1 }
  0xfb   : > { %v4304_v9 = vpop.f32.mrf.mxu1  ;;  %v4306_v60 = vpop.f32.mrf.mxu0  ;;  %3387 = vmatprep.mubr.msk.bf16.mxu0 %vm429_vm2, %v4185_v19 }
  0xfc   : > { %5090 = vst [vmem:[#allocation6_spill] sm:$0xff] %v4304_v9  ;;  %3350 = vmatmul.mubr.msk.bf16.gmra.mxu1 %vm429_vm2, %v4108_v26  ;;  %v4331_v5 = vsel %vm871_vm3, %v1581_v56, %v1582_v44 }
  0xfd   : > { %v4314_v61 = vpop.f32.mrf.mxu1  ;;  %v4316_v32 = vpop.f32.mrf.mxu0  ;;  %3353 = vmatprep.mubr.msk.bf16.mxu1 %vm429_vm2, %v4121_v37 }
  0xfe   : > { %5091 = vst [vmem:[#allocation7_spill] sm:$0xff] %v4314_v61 }
  0xff   : > { %v4324_v28 = vpop.f32.mrf.mxu1  ;;  %v4326_v43 = vpop.f32.mrf.mxu0 }
 0x100   : > { %5092 = vst [vmem:[#allocation8_spill] sm:$0xff] %v4324_v28 }
 0x101   : > { %v4328_v2 = vpop.f32.mrf.mxu1 }
 0x102   : > { %5093 = vst [vmem:[#allocation9_spill] sm:$0xff] %v4328_v2  ;;  %v4333_v35 = vpop.f32.mrf.mxu0  ;;  %3388 = vmatmul.mubr.msk.bf16.gmra.mxu0 %vm429_vm2, %v4322_v13 }
 0x103   : > { %3427 = vmatprep.mubr.msk.bf16.mxu0 %vm429_vm2, %v3984_v31 }
 0x104   : > { %v4339_v19 = vpop.f32.mrf.mxu1  ;;  %3354 = vmatmul.mubr.msk.bf16.gmra.mxu1 %vm429_vm2, %v4331_v5  ;;  %v4343_v30 = vpop.f32.mrf.mxu0 }
 0x105   : > { %5094 = vst [vmem:[#allocation10_spill] sm:$0xff] %v4339_v19  ;;  %3393 = vmatprep.mubr.msk.bf16.mxu1 %vm429_vm2, %v3823_v33 }
 0x106   : > { %v4347_v45 = vpop.f32.mrf.mxu1  ;;  %v4349_v10 = vpop.f32.mrf.mxu0 }
 0x107   : > { %5095 = vst [vmem:[#allocation11_spill] sm:$0xff] %v4347_v45 }
 0x108   : > { %v4351_v8 = vpop.f32.mrf.mxu1  ;;  %v4353_v21 = vpop.f32.mrf.mxu0 }
 0x109   : > { %5096 = vst [vmem:[#allocation12_spill] sm:$0xff] %v4351_v8 }
 0x10a   : > { %v4355_v56 = vpop.f32.mrf.mxu1  ;;  %v3225_v31 = vpop.f32.mrf.mxu0  ;;  %3428 = vmatmul.mubr.msk.bf16.vlgmr.msra.gmra.mxu0 %vm429_vm2, %v4015_v22 }
 0x10b   : > { %5097 = vst [vmem:[#allocation13_spill] sm:$0xff] %v4355_v56  ;;  %3431 = vmatprep.mubr.msk.bf16.mxu0 %vm429_vm2, %v4018_v39 }
 0x10c   : > { %v3191_v44 = vpop.f32.mrf.mxu1  ;;  %3394 = vmatmul.mubr.msk.bf16.vlgmr.msra.gmra.mxu1 %vm429_vm2, %v3859_v4  ;;  %v1007_v33 = vpop.f32.mrf.mxu0 }
 0x10d   : > { %v721_v45 = vadd.f32 %v3191_v44, %v3157_v46  ;;  %3397 = vmatprep.mubr.msk.bf16.mxu1 %vm429_vm2, %v3892_v17 }
 0x10e   : > { %v712_v8 = vpop.f32.mrf.mxu1  ;;  %v3226_v19 = vpop.f32.mrf.mxu0 }
 0x10f   : > { %v4365_v2 = vadd.f32 %v3225_v31, %v721_v45  ;;  %v713_v56 = vadd.f32 %v712_v8, %v4254_v12 }
 0x110   : > { %v3192_v28 = vpop.f32.mrf.mxu1  ;;  %v1010_v22 = vpop.f32.mrf.mxu0 }
 0x111   : > { %v4368_v61 = vadd.f32 %v1007_v33, %v713_v56  ;;  %v724_v39 = vadd.f32 %v3192_v28, %v4260_v49 }
 0x112   : > { %v715_v36 = vpop.f32.mrf.mxu1  ;;  %v3229_v9 = vpop.f32.mrf.mxu0  ;;  %3432 = vmatmul.mubr.msk.bf16.gmra.mxu0 %vm429_vm2, %v4033_v38 }
 0x113   : > { %v4373_v4 = vadd.f32 %v3226_v19, %v724_v39  ;;  %v716_v17 = vadd.f32 %v715_v36, %v4268_v0  ;;  %3435 = vmatprep.mubr.msk.bf16.mxu0 %vm429_vm2, %v4036_v58 }
 0x114   : > { %v3195_v46 = vpop.f32.mrf.mxu1  ;;  %3398 = vmatmul.mubr.msk.bf16.gmra.mxu1 %vm429_vm2, %v3919_v34  ;;  %v1023_v12 = vpop.f32.mrf.mxu0 }
 0x115   : > { %v4380_v45 = vadd.f32 %v1010_v22, %v716_v17  ;;  %v737_v49 = vadd.f32 %v3195_v46, %v4276_v29  ;;  %3401 = vmatprep.mubr.msk.bf16.mxu1 %vm429_vm2, %v3947_v15 }
 0x116   : > { %v728_v38 = vpop.f32.mrf.mxu1  ;;  %v3230_v28 = vpop.f32.mrf.mxu0 }
 0x117   : > { %v4385_v19 = vadd.f32 %v3229_v9, %v737_v49  ;;  %v729_v36 = vadd.f32 %v728_v38, %v4282_v54 }
 0x118   : > { %v3196_v0 = vpop.f32.mrf.mxu1  ;;  %v1026_v58 = vpop.f32.mrf.mxu0 }
 0x119   : > { %v4388_v8 = vadd.f32 %v1023_v12, %v729_v36  ;;  %v740_v34 = vadd.f32 %v3196_v0, %v4290_v55 }
 0x11a   : > { %v731_v56 = vpop.f32.mrf.mxu1  ;;  %v3233_v31 = vpop.f32.mrf.mxu0  ;;  %3436 = vmatmul.mubr.msk.bf16.gmra.mxu0 %vm429_vm2, %v4051_v1 }
 0x11b   : > { %v4393_v29 = vadd.f32 %v3230_v28, %v740_v34  ;;  %v732_v15 = vadd.f32 %v731_v56, %v4296_v3  ;;  %3439 = vmatprep.mubr.msk.bf16.mxu0 %vm429_vm2, %v4054_v14 }
 0x11c   : > { %v3199_v9 = vpop.f32.mrf.mxu1  ;;  %3402 = vmatmul.mubr.msk.bf16.gmra.mxu1 %vm429_vm2, %v3962_v62  ;;  %v1039_v54 = vpop.f32.mrf.mxu0 }
 0x11d   : > { %v4400_v44 = vadd.f32 %v1026_v58, %v732_v15  ;;  %v753_v55 = vadd.f32 %v3199_v9, %v4300_v16  ;;  %3405 = vmatprep.mubr.msk.bf16.mxu1 %vm429_vm2, %v3770_v57 }
 0x11e   : > { %v744_v1 = vpop.f32.mrf.mxu1  ;;  %v3234_v33 = vpop.f32.mrf.mxu0 }
 0x11f   : > { %v4405_v22 = vadd.f32 %v3233_v31, %v753_v55  ;;  %v745_v3 = vadd.f32 %v744_v1, %v4306_v60 }
 0x120   : > { %v3200_v39 = vpop.f32.mrf.mxu1  ;;  %v1042_v14 = vpop.f32.mrf.mxu0 }
 0x121   : > { %v4408_v17 = vadd.f32 %v1039_v54, %v745_v3  ;;  %v756_v62 = vadd.f32 %v3200_v39, %v4316_v32 }
 0x122   : > { %v747_v46 = vpop.f32.mrf.mxu1  ;;  %v3237_v12 = vpop.f32.mrf.mxu0  ;;  %3440 = vmatmul.mubr.msk.bf16.gmra.mxu0 %vm429_vm2, %v4069_v7 }
 0x123   : > { %v4413_v16 = vadd.f32 %v3234_v33, %v756_v62  ;;  %v748_v57 = vadd.f32 %v747_v46, %v4326_v43  ;;  %3443 = vmatprep.mubr.msk.bf16.mxu0 %vm429_vm2, %v4072_v47  ;;  %v1988_v46 = vshll.u32 %v4322_v13, 16 }
 0x124   : > { %v3203_v49 = vpop.f32.mrf.mxu1  ;;  %3406 = vmatmul.mubr.msk.bf16.gmra.mxu1 %vm429_vm2, %v3812_v25  ;;  %v1055_v60 = vpop.f32.mrf.mxu0 }
 0x125   : > { %v4420_v38 = vadd.f32 %v1042_v14, %v748_v57  ;;  %v769_v32 = vadd.f32 %v3203_v49, %v4333_v35  ;;  %3409 = vmatprep.mubr.msk.bf16.mxu1 %vm429_vm2, %v3844_v51 }
 0x126   : > { %v760_v7 = vpop.f32.mrf.mxu1  ;;  %v3238_v28 = vpop.f32.mrf.mxu0 }
 0x127   : > { %v4425_v36 = vadd.f32 %v3237_v12, %v769_v32  ;;  %v761_v43 = vadd.f32 %v760_v7, %v4343_v30  ;;  %v1990_v7 = vrot.slane %v1988_v46, 1 }
 0x128   : > { %v3204_v0 = vpop.f32.mrf.mxu1  ;;  %v1058_v47 = vpop.f32.mrf.mxu0 }
 0x129   : > { %v4428_v58 = vadd.f32 %v1055_v60, %v761_v43  ;;  %v772_v25 = vadd.f32 %v3204_v0, %v4349_v10 }
 0x12a   : > { %v763_v34 = vpop.f32.mrf.mxu1  ;;  %v3241_v56 = vpop.f32.mrf.mxu0  ;;  %3444 = vmatmul.mubr.msk.bf16.gmra.mxu0 %vm429_vm2, %v4087_v24 }
 0x12b   : > { %v4433_v35 = vadd.f32 %v3238_v28, %v772_v25  ;;  %v764_v51 = vadd.f32 %v763_v34, %v4353_v21  ;;  %3447 = vmatprep.mubr.msk.bf16.mxu0 %vm429_vm2, %v4090_v50 }
 0x12c   : > { %v3207_v31 = vpop.f32.mrf.mxu1  ;;  %3410 = vmatmul.mubr.msk.bf16.gmra.mxu1 %vm429_vm2, %v3871_v20  ;;  %v1071_v30 = vpop.f32.mrf.mxu0 }
 0x12d   : > { %v4440_v15 = vadd.f32 %v1058_v47, %v764_v51  ;;  %v785_v10 = vadd.f32 %v3207_v31, %v4256_v6  ;;  %3413 = vmatprep.mubr.msk.bf16.mxu1 %vm429_vm2, %v3904_v63  ;;  %v196_v6 = vld [vmem:[%s3710_s3 + $0x1a8] sm:$0x3] }
 0x12e   : > { %v776_v24 = vpop.f32.mrf.mxu1  ;;  %v3242_v9 = vpop.f32.mrf.mxu0  ;;  %v5098_v51 = vld [vmem:[#allocation6_spill] sm:$0xff] }
 0x12f   : > { %v4445_v54 = vadd.f32 %v3241_v56, %v785_v10  ;;  %v777_v21 = vadd.f32 %v776_v24, %v4266_v42 }
 0x130   : > { %v3208_v50 = vpop.f32.mrf.mxu1  ;;  %v1074_v55 = vpop.f32.mrf.mxu0 }
 0x131   : > { %v4448_v1 = vadd.f32 %v1071_v30, %v777_v21  ;;  %v788_v20 = vadd.f32 %v3208_v50, %v4272_v18 }
 0x132   : > { %v779_v33 = vpop.f32.mrf.mxu1  ;;  %v3245_v3 = vpop.f32.mrf.mxu0  ;;  %3448 = vmatmul.mubr.msk.bf16.gmra.mxu0 %vm429_vm2, %v4105_v40  ;;  %v232_v40 = vpack.c.bf16 %v196_v6, %v196_v6 }
 0x133   : > { %v4454_v39 = vadd.f32 %v3242_v9, %v788_v20  ;;  %v780_v63 = vadd.f32 %v779_v33, %v4274_v59  ;;  %3451 = vmatprep.mubr.msk.bf16.mxu0 %vm429_vm2, %v4108_v26  ;;  %v5101_v20 = vld [vmem:[#allocation8_spill] sm:$0xff] }
 0x134   : > { %v3211_v42 = vpop.f32.mrf.mxu1  ;;  %3414 = vmatmul.mubr.msk.bf16.gmra.mxu1 %vm429_vm2, %v3931_v53  ;;  %v1087_v14 = vpop.f32.mrf.mxu0  ;;  %v1986_v53 = vshrl.u32 %v4322_v13, 16  ;;  %v1993_v28 = vshll.u32 %v232_v40, 16  ;;  %v2201_v25 = vrot.slane %v232_v40, 1 }
 0x135   : > { %v4461_v62 = vadd.f32 %v1074_v55, %v780_v63  ;;  %v801_v18 = vadd.f32 %v3211_v42, %v4278_v48  ;;  %3417 = vmatprep.mubr.msk.bf16.mxu1 %vm429_vm2, %v3956_v52 }
 0x136   : > { %v792_v12 = vpop.f32.mrf.mxu1  ;;  %v3246_v59 = vpop.f32.mrf.mxu0  ;;  %v1991_v30 = vor.u32 %v1990_v7, %v1986_v53 }
 0x137   : > { %v4467_v57 = vadd.f32 %v3245_v3, %v801_v18  ;;  %v793_v26 = vadd.f32 %v792_v12, %v4288_v23  ;;  %v2200_v23 = vrot.slane %v4322_v13, 1  ;;  %v5100_v13 = vld [vmem:[#allocation7_spill] sm:$0xff] }
 0x138   : > { %v3212_v49 = vpop.f32.mrf.mxu1  ;;  %v1090_v60 = vpop.f32.mrf.mxu0 }
 0x139   : > { %v4471_v32 = vadd.f32 %v1087_v14, %v793_v26  ;;  %v804_v48 = vadd.f32 %v3212_v49, %v4294_v41  ;;  %v2202_v21 = vsel %vm871_vm3, %v2200_v23, %v2201_v25  ;;  %v5102_v14 = vld [vmem:[#allocation9_spill] sm:$0xff] }
 0x13a   : > { %v795_v52 = vpop.f32.mrf.mxu1  ;;  %v3249_v43 = vpop.f32.mrf.mxu0  ;;  %3452 = vmatmul.mubr.msk.bf16.gmra.mxu0 %vm429_vm2, %v4121_v37  ;;  %v5099_v37 = vld [vmem:[#allocation5_spill] sm:$0xff] }
 0x13b   : > { %v4476_v0 = vadd.f32 %v3246_v59, %v804_v48  ;;  %v796_v47 = vadd.f32 %v795_v52, %v4298_v27  ;;  %3455 = vmatprep.mubr.msk.bf16.mxu0 %vm429_vm2, %v4331_v5  ;;  %v1995_v27 = vrot.slane %v1993_v28, 1  ;;  %v5103_v59 = vld [vmem:[#allocation10_spill] sm:$0xff]  ;;  %v5104_v48 = vld [vmem:[#allocation11_spill] sm:$0xff] }
 0x13c   : > { %v3215_v34 = vpop.f32.mrf.mxu1  ;;  %3418 = vmatmul.mubr.msk.bf16.gmra.mxu1 %vm429_vm2, %v3968_v11  ;;  %v1103_v41 = vpop.f32.mrf.mxu0 }
 0x13d   : > { %v4484_v56 = vadd.f32 %v1090_v60, %v796_v47  ;;  %v817_v31 = vadd.f32 %v3215_v34, %v5098_v51  ;;  %3421 = vmatprep.mubr.msk.bf16.mxu1 %vm429_vm2, %v5099_v37  ;;  %v1996_v3 = vsel %vm234_vm1, %v1991_v30, %v1995_v27  ;;  %v5105_v47 = vld [vmem:[#allocation12_spill] sm:$0xff]  ;;  %v5106_v51 = vld [vmem:[#allocation13_spill] sm:$0xff] }
 0x13e   : > { %v808_v10 = vpop.f32.mrf.mxu1  ;;  %v3250_v24 = vpop.f32.mrf.mxu0 }
 0x13f   : > { %v4489_v5 = vadd.f32 %v3249_v43, %v817_v31  ;;  %v809_v9 = vadd.f32 %v808_v10, %v5100_v13 }
 0x140   : > { %v3216_v50 = vpop.f32.mrf.mxu1  ;;  %v1106_v11 = vpop.f32.mrf.mxu0 }
 0x141   : > { %v4493_v55 = vadd.f32 %v1103_v41, %v809_v9  ;;  %v820_v33 = vadd.f32 %v3216_v50, %v5101_v20 }
 0x142   : > { %v811_v6 = vpop.f32.mrf.mxu1  ;;  %v3253_v63 = vpop.f32.mrf.mxu0  ;;  %3456 = vmatmul.mubr.msk.bf16.gmra.mxu0 %vm429_vm2, %v2202_v21 }
 0x143   : > { %v4498_v42 = vadd.f32 %v3250_v24, %v820_v33  ;;  %v812_v18 = vadd.f32 %v811_v6, %v5102_v14 }
 0x144   : > { %v3219_v40 = vpop.f32.mrf.mxu1  ;;  %3422 = vmatmul.mubr.msk.bf16.gmra.mxu1 %vm429_vm2, %v1996_v3  ;;  %v1119_v46 = vpop.f32.mrf.mxu0 }
 0x145   : > { %v4502_v12 = vadd.f32 %v1106_v11, %v812_v18  ;;  %v833_v26 = vadd.f32 %v3219_v40, %v5103_v59 }
 0x146   : > { %v824_v49 = vpop.f32.mrf.mxu1  ;;  %v3254_v60 = vpop.f32.mrf.mxu0 }
 0x147   : > { %v4505_v53 = vadd.f32 %v3253_v63, %v833_v26  ;;  %v825_v7 = vadd.f32 %v824_v49, %v5104_v48 }
 0x148   : > { %v3220_v28 = vpop.f32.mrf.mxu1  ;;  %v1122_v52 = vpop.f32.mrf.mxu0 }
 0x149   : > { %v4508_v43 = vadd.f32 %v1119_v46, %v825_v7  ;;  %v836_v23 = vadd.f32 %v3220_v28, %v5105_v47 }
 0x14a   : > { %v827_v25 = vpop.f32.mrf.mxu1  ;;  %v3293_v34 = vpop.f32.mrf.mxu0 }
 0x14b   : > { %v4511_v41 = vadd.f32 %v3254_v60, %v836_v23  ;;  %v828_v31 = vadd.f32 %v827_v25, %v5106_v51 }
 0x14c   : > { %v3259_v37 = vpop.f32.mrf.mxu1  ;;  %v1420_v30 = vpop.f32.mrf.mxu0 }
 0x14d   : > { %v4514_v27 = vadd.f32 %v1122_v52, %v828_v31  ;;  %v1337_v10 = vadd.f32 %v3259_v37, %v4365_v2 }
 0x14e   : > { %v1208_v24 = vpop.f32.mrf.mxu1  ;;  %v3294_v13 = vpop.f32.mrf.mxu0 }
 0x14f   : > { %v4517_v9 = vadd.f32 %v3293_v34, %v1337_v10  ;;  %v1335_v21 = vadd.f32 %v1208_v24, %v4368_v61 }
 0x150   : > { %v3260_v50 = vpop.f32.mrf.mxu1  ;;  %v1423_v11 = vpop.f32.mrf.mxu0 }
 0x151   : > { %v4520_v20 = vadd.f32 %v1420_v30, %v1335_v21  ;;  %v1338_v33 = vadd.f32 %v3260_v50, %v4373_v4 }
 0x152   : > { %v1211_v3 = vpop.f32.mrf.mxu1  ;;  %v3297_v6 = vpop.f32.mrf.mxu0 }
 0x153   : > { %v4523_v63 = vadd.f32 %v3294_v13, %v1338_v33  ;;  %v1336_v14 = vadd.f32 %v1211_v3, %v4380_v45 }
 0x154   : > { %v3263_v18 = vpop.f32.mrf.mxu1  ;;  %v1436_v2 = vpop.f32.mrf.mxu0 }
 0x155   : > { %v4526_v40 = vadd.f32 %v1423_v11, %v1336_v14  ;;  %v1341_v46 = vadd.f32 %v3263_v18, %v4385_v19 }
 0x156   : > { %v1224_v59 = vpop.f32.mrf.mxu1  ;;  %v3298_v61 = vpop.f32.mrf.mxu0 }
 0x157   : > { %v4529_v26 = vadd.f32 %v3297_v6, %v1341_v46  ;;  %v1339_v49 = vadd.f32 %v1224_v59, %v4388_v8 }
 0x158   : > { %v3264_v60 = vpop.f32.mrf.mxu1  ;;  %v1439_v4 = vpop.f32.mrf.mxu0 }
 0x159   : > { %v4532_v48 = vadd.f32 %v1436_v2, %v1339_v49  ;;  %v1342_v7 = vadd.f32 %v3264_v60, %v4393_v29 }
 0x15a   : > { %v1227_v28 = vpop.f32.mrf.mxu1  ;;  %v3301_v45 = vpop.f32.mrf.mxu0 }
 0x15b   : > { %v4535_v52 = vadd.f32 %v3298_v61, %v1342_v7  ;;  %v1340_v47 = vadd.f32 %v1227_v28, %v4400_v44 }
 0x15c   : > { %v3267_v23 = vpop.f32.mrf.mxu1  ;;  %v1452_v19 = vpop.f32.mrf.mxu0 }
 0x15d   : > { %v4538_v25 = vadd.f32 %v1439_v4, %v1340_v47  ;;  %v1345_v34 = vadd.f32 %v3267_v23, %v4405_v22 }
 0x15e   : > { %v1240_v51 = vpop.f32.mrf.mxu1  ;;  %v3302_v8 = vpop.f32.mrf.mxu0 }
 0x15f   : > { %v4541_v31 = vadd.f32 %v3301_v45, %v1345_v34  ;;  %v1343_v37 = vadd.f32 %v1240_v51, %v4408_v17 }
 0x160   : > { %v3268_v30 = vpop.f32.mrf.mxu1  ;;  %v1455_v29 = vpop.f32.mrf.mxu0 }
 0x161   : > { %v4544_v10 = vadd.f32 %v1452_v19, %v1343_v37  ;;  %v1346_v24 = vadd.f32 %v3268_v30, %v4413_v16 }
 0x162   : > { %v1243_v13 = vpop.f32.mrf.mxu1  ;;  %v3305_v44 = vpop.f32.mrf.mxu0 }
 0x163   : > { %v4547_v21 = vadd.f32 %v3302_v8, %v1346_v24  ;;  %v1344_v50 = vadd.f32 %v1243_v13, %v4420_v38 }
 0x164   : > { %v3271_v11 = vpop.f32.mrf.mxu1  ;;  %v1468_v22 = vpop.f32.mrf.mxu0 }
 0x165   : > { %v4550_v33 = vadd.f32 %v1455_v29, %v1344_v50  ;;  %v1349_v3 = vadd.f32 %v3271_v11, %v4425_v36 }
 0x166   : > { %v1256_v6 = vpop.f32.mrf.mxu1  ;;  %v3306_v17 = vpop.f32.mrf.mxu0 }
 0x167   : > { %v4553_v14 = vadd.f32 %v3305_v44, %v1349_v3  ;;  %v1347_v18 = vadd.f32 %v1256_v6, %v4428_v58 }
 0x168   : > { %v3272_v2 = vpop.f32.mrf.mxu1  ;;  %v1471_v16 = vpop.f32.mrf.mxu0 }
 0x169   : > { %v4556_v46 = vadd.f32 %v1468_v22, %v1347_v18  ;;  %v1350_v59 = vadd.f32 %v3272_v2, %v4433_v35 }
 0x16a   : > { %v1259_v61 = vpop.f32.mrf.mxu1  ;;  %v3309_v38 = vpop.f32.mrf.mxu0 }
 0x16b   : > { %v4559_v49 = vadd.f32 %v3306_v17, %v1350_v59  ;;  %v1348_v60 = vadd.f32 %v1259_v61, %v4440_v15 }
 0x16c   : > { %v3275_v4 = vpop.f32.mrf.mxu1  ;;  %v1484_v36 = vpop.f32.mrf.mxu0 }
 0x16d   : > { %v4562_v7 = vadd.f32 %v1471_v16, %v1348_v60  ;;  %v1353_v28 = vadd.f32 %v3275_v4, %v4445_v54 }
 0x16e   : > { %v1272_v45 = vpop.f32.mrf.mxu1  ;;  %v3310_v58 = vpop.f32.mrf.mxu0 }
 0x16f   : > { %v4565_v47 = vadd.f32 %v3309_v38, %v1353_v28  ;;  %v1351_v23 = vadd.f32 %v1272_v45, %v4448_v1 }
 0x170   : > { %v3276_v19 = vpop.f32.mrf.mxu1  ;;  %v1487_v35 = vpop.f32.mrf.mxu0 }
 0x171   : > { %v4568_v34 = vadd.f32 %v1484_v36, %v1351_v23  ;;  %v1354_v51 = vadd.f32 %v3276_v19, %v4454_v39 }
 0x172   : > { %v1275_v8 = vpop.f32.mrf.mxu1  ;;  %v3313_v15 = vpop.f32.mrf.mxu0 }
 0x173   : > { %v4571_v37 = vadd.f32 %v3310_v58, %v1354_v51  ;;  %v1352_v30 = vadd.f32 %v1275_v8, %v4461_v62 }
 0x174   : > { %v3279_v29 = vpop.f32.mrf.mxu1  ;;  %v1500_v54 = vpop.f32.mrf.mxu0 }
 0x175   : > { %v4574_v24 = vadd.f32 %v1487_v35, %v1352_v30  ;;  %v1357_v13 = vadd.f32 %v3279_v29, %v4467_v57 }
 0x176   : > { %v1288_v44 = vpop.f32.mrf.mxu1  ;;  %v3314_v1 = vpop.f32.mrf.mxu0 }
 0x177   : > { %v4577_v50 = vadd.f32 %v3313_v15, %v1357_v13  ;;  %v1355_v11 = vadd.f32 %v1288_v44, %v4471_v32 }
 0x178   : > { %v3280_v22 = vpop.f32.mrf.mxu1  ;;  %v1503_v39 = vpop.f32.mrf.mxu0 }
 0x179   : > { %v4580_v3 = vadd.f32 %v1500_v54, %v1355_v11  ;;  %v1358_v6 = vadd.f32 %v3280_v22, %v4476_v0 }
 0x17a   : > { %v1291_v17 = vpop.f32.mrf.mxu1  ;;  %v3317_v62 = vpop.f32.mrf.mxu0 }
 0x17b   : > { %v4583_v18 = vadd.f32 %v3314_v1, %v1358_v6  ;;  %v1356_v2 = vadd.f32 %v1291_v17, %v4484_v56 }
 0x17c   : > { %v3283_v16 = vpop.f32.mrf.mxu1  ;;  %v1516_v57 = vpop.f32.mrf.mxu0 }
 0x17d   : > { %v4586_v59 = vadd.f32 %v1503_v39, %v1356_v2  ;;  %v1361_v61 = vadd.f32 %v3283_v16, %v4489_v5 }
 0x17e   : > { %v1304_v38 = vpop.f32.mrf.mxu1  ;;  %v3318_v32 = vpop.f32.mrf.mxu0 }
 0x17f   : > { %v4589_v60 = vadd.f32 %v3317_v62, %v1361_v61  ;;  %v1359_v4 = vadd.f32 %v1304_v38, %v4493_v55 }
 0x180   : > { %v3284_v36 = vpop.f32.mrf.mxu1  ;;  %v1519_v0 = vpop.f32.mrf.mxu0 }
 0x181   : > { %v4592_v28 = vadd.f32 %v1516_v57, %v1359_v4  ;;  %v1362_v45 = vadd.f32 %v3284_v36, %v4498_v42 }
 0x182   : > { %v1307_v58 = vpop.f32.mrf.mxu1  ;;  %v3321_v56 = vpop.f32.mrf.mxu0 }
 0x183   : > { %v4595_v23 = vadd.f32 %v3318_v32, %v1362_v45  ;;  %v1360_v19 = vadd.f32 %v1307_v58, %v4502_v12 }
 0x184   : > { %v3287_v35 = vpop.f32.mrf.mxu1  ;;  %v1532_v5 = vpop.f32.mrf.mxu0 }
 0x185   : > { %v4598_v51 = vadd.f32 %v1519_v0, %v1360_v19  ;;  %v1365_v8 = vadd.f32 %v3287_v35, %v4505_v53 }
 0x186   : > { %v1320_v15 = vpop.f32.mrf.mxu1  ;;  %v3322_v55 = vpop.f32.mrf.mxu0 }
 0x187   : > { %v4601_v30 = vadd.f32 %v3321_v56, %v1365_v8  ;;  %v1363_v29 = vadd.f32 %v1320_v15, %v4508_v43 }
 0x188   : > { %v3288_v54 = vpop.f32.mrf.mxu1  ;;  %v1535_v42 = vpop.f32.mrf.mxu0 }
 0x189   : > { %v4604_v13 = vadd.f32 %v1532_v5, %v1363_v29  ;;  %v1366_v44 = vadd.f32 %v3288_v54, %v4511_v41 }
 0x18a   : > { %v1323_v1 = vpop.f32.mrf.mxu1  ;;  %v4607_v12 = vpop.f32.mrf.mxu0 }
 0x18b   : > { %v4609_v11 = vadd.f32 %v3322_v55, %v1366_v44  ;;  %v1364_v22 = vadd.f32 %v1323_v1, %v4514_v27 }
 0x18c   : > { %v4612_v53 = vpop.f32.mrf.mxu1  ;;  %v4614_v39 = vpop.f32.mrf.mxu0 }
 0x18d   : > { %v4616_v6 = vadd.f32 %v1535_v42, %v1364_v22 }
 0x18e   : > { %v4618_v43 = vpop.f32.mrf.mxu1  ;;  %v4620_v17 = vpop.f32.mrf.mxu0 }
 0x190   : > { %v4622_v62 = vpop.f32.mrf.mxu1  ;;  %v4624_v41 = vpop.f32.mrf.mxu0 }
 0x192   : > { %v4626_v2 = vpop.f32.mrf.mxu1  ;;  %v3365_v16 = vpop.f32.mrf.mxu0 }
 0x194   : > { %v3331_v57 = vpop.f32.mrf.mxu1  ;;  %v1843_v61 = vpop.f32.mrf.mxu0 }
 0x195   : > { %v1759_v27 = vadd.f32 %v3331_v57, %v4529_v26 }
 0x196   : > { %v1642_v38 = vpop.f32.mrf.mxu1  ;;  %v3366_v32 = vpop.f32.mrf.mxu0 }
 0x197   : > { %v4629_v4 = vadd.f32 %v3365_v16, %v1759_v27  ;;  %v1757_v36 = vadd.f32 %v1642_v38, %v4532_v48 }
 0x198   : > { %v3332_v0 = vpop.f32.mrf.mxu1  ;;  %v1846_v45 = vpop.f32.mrf.mxu0 }
 0x199   : > { %v4632_v58 = vadd.f32 %v1843_v61, %v1757_v36  ;;  %v1760_v56 = vadd.f32 %v3332_v0, %v4535_v52 }
 0x19a   : > { %v1645_v19 = vpop.f32.mrf.mxu1  ;;  %v3369_v35 = vpop.f32.mrf.mxu0 }
 0x19b   : > { %v4635_v5 = vadd.f32 %v3366_v32, %v1760_v56  ;;  %v1758_v8 = vadd.f32 %v1645_v19, %v4538_v25 }
 0x19c   : > { %v3335_v15 = vpop.f32.mrf.mxu1  ;;  %v1859_v26 = vpop.f32.mrf.mxu0 }
 0x19d   : > { %v4638_v55 = vadd.f32 %v1846_v45, %v1758_v8  ;;  %v1763_v29 = vadd.f32 %v3335_v15, %v4541_v31 }
 0x19e   : > { %v1658_v54 = vpop.f32.mrf.mxu1  ;;  %v3370_v48 = vpop.f32.mrf.mxu0 }
 0x19f   : > { %v4641_v42 = vadd.f32 %v3369_v35, %v1763_v29  ;;  %v1761_v44 = vadd.f32 %v1658_v54, %v4544_v10 }
 0x1a0   : > { %v3336_v1 = vpop.f32.mrf.mxu1  ;;  %v1862_v52 = vpop.f32.mrf.mxu0 }
 0x1a1   : > { %v4644_v22 = vadd.f32 %v1859_v26, %v1761_v44  ;;  %v1764_v16 = vadd.f32 %v3336_v1, %v4547_v21 }
 0x1a2   : > { %v1661_v57 = vpop.f32.mrf.mxu1  ;;  %v3373_v25 = vpop.f32.mrf.mxu0 }
 0x1a3   : > { %v4647_v61 = vadd.f32 %v3370_v48, %v1764_v16  ;;  %v1762_v27 = vadd.f32 %v1661_v57, %v4550_v33 }
 0x1a4   : > { %v3339_v38 = vpop.f32.mrf.mxu1  ;;  %v1875_v31 = vpop.f32.mrf.mxu0 }
 0x1a5   : > { %v4650_v32 = vadd.f32 %v1862_v52, %v1762_v27  ;;  %v1767_v36 = vadd.f32 %v3339_v38, %v4553_v14 }
 0x1a6   : > { %v1674_v0 = vpop.f32.mrf.mxu1  ;;  %v3374_v10 = vpop.f32.mrf.mxu0 }
 0x1a7   : > { %v4653_v45 = vadd.f32 %v3373_v25, %v1767_v36  ;;  %v1765_v56 = vadd.f32 %v1674_v0, %v4556_v46 }
 0x1a8   : > { %v3340_v19 = vpop.f32.mrf.mxu1  ;;  %v1878_v21 = vpop.f32.mrf.mxu0 }
 0x1a9   : > { %v4656_v35 = vadd.f32 %v1875_v31, %v1765_v56  ;;  %v1768_v8 = vadd.f32 %v3340_v19, %v4559_v49 }
 0x1aa   : > { %v1677_v15 = vpop.f32.mrf.mxu1  ;;  %v3377_v33 = vpop.f32.mrf.mxu0 }
 0x1ab   : > { %v4659_v26 = vadd.f32 %v3374_v10, %v1768_v8  ;;  %v1766_v29 = vadd.f32 %v1677_v15, %v4562_v7 }
 0x1ac   : > { %v3343_v54 = vpop.f32.mrf.mxu1  ;;  %v1891_v14 = vpop.f32.mrf.mxu0 }
 0x1ad   : > { %v4662_v48 = vadd.f32 %v1878_v21, %v1766_v29  ;;  %v1771_v44 = vadd.f32 %v3343_v54, %v4565_v47 }
 0x1ae   : > { %v1690_v1 = vpop.f32.mrf.mxu1  ;;  %v3378_v46 = vpop.f32.mrf.mxu0 }
 0x1af   : > { %v4665_v52 = vadd.f32 %v3377_v33, %v1771_v44  ;;  %v1769_v16 = vadd.f32 %v1690_v1, %v4568_v34 }
 0x1b0   : > { %v3344_v57 = vpop.f32.mrf.mxu1  ;;  %v1894_v49 = vpop.f32.mrf.mxu0 }
 0x1b1   : > { %v4668_v25 = vadd.f32 %v1891_v14, %v1769_v16  ;;  %v1772_v27 = vadd.f32 %v3344_v57, %v4571_v37 }
 0x1b2   : > { %v1693_v38 = vpop.f32.mrf.mxu1  ;;  %v3381_v7 = vpop.f32.mrf.mxu0 }
 0x1b3   : > { %v4671_v31 = vadd.f32 %v3378_v46, %v1772_v27  ;;  %v1770_v36 = vadd.f32 %v1693_v38, %v4574_v24 }
 0x1b4   : > { %v3347_v0 = vpop.f32.mrf.mxu1  ;;  %v1907_v47 = vpop.f32.mrf.mxu0 }
 0x1b5   : > { %v4674_v10 = vadd.f32 %v1894_v49, %v1770_v36  ;;  %v1775_v56 = vadd.f32 %v3347_v0, %v4577_v50 }
 0x1b6   : > { %v1706_v19 = vpop.f32.mrf.mxu1  ;;  %v3382_v34 = vpop.f32.mrf.mxu0 }
 0x1b7   : > { %v4677_v21 = vadd.f32 %v3381_v7, %v1775_v56  ;;  %v1773_v8 = vadd.f32 %v1706_v19, %v4580_v3 }
 0x1b8   : > { %v3348_v15 = vpop.f32.mrf.mxu1  ;;  %v1910_v37 = vpop.f32.mrf.mxu0 }
 0x1b9   : > { %v4680_v33 = vadd.f32 %v1907_v47, %v1773_v8  ;;  %v1776_v29 = vadd.f32 %v3348_v15, %v4583_v18 }
 0x1ba   : > { %v1709_v54 = vpop.f32.mrf.mxu1  ;;  %v3385_v24 = vpop.f32.mrf.mxu0 }
 0x1bb   : > { %v4683_v14 = vadd.f32 %v3382_v34, %v1776_v29  ;;  %v1774_v44 = vadd.f32 %v1709_v54, %v4586_v59 }
 0x1bc   : > { %v3351_v1 = vpop.f32.mrf.mxu1  ;;  %v1923_v50 = vpop.f32.mrf.mxu0 }
 0x1bd   : > { %v4686_v46 = vadd.f32 %v1910_v37, %v1774_v44  ;;  %v1779_v16 = vadd.f32 %v3351_v1, %v4589_v60  ;;  %v1755_v37 = vadd.f32 %v4612_v53, %v4517_v9  ;;  %v1756_v9 = vadd.f32 %v4622_v62, %v4523_v63 }
 0x1be   : > { %v1722_v57 = vpop.f32.mrf.mxu1  ;;  %v3386_v3 = vpop.f32.mrf.mxu0 }
 0x1bf   : > { %v4689_v49 = vadd.f32 %v3385_v24, %v1779_v16  ;;  %v1777_v27 = vadd.f32 %v1722_v57, %v4592_v28  ;;  %v1956_v16 = vadd.f32 %v4607_v12, %v1755_v37  ;;  %v1957_v12 = vadd.f32 %v4620_v17, %v1756_v9 }
 0x1c0   : > { %v3352_v38 = vpop.f32.mrf.mxu1  ;;  %v1926_v18 = vpop.f32.mrf.mxu0 }
 0x1c1   : > { %v4692_v7 = vadd.f32 %v1923_v50, %v1777_v27  ;;  %v1780_v36 = vadd.f32 %v3352_v38, %v4595_v23 }
 0x1c2   : > { %v1725_v0 = vpop.f32.mrf.mxu1  ;;  %v3389_v59 = vpop.f32.mrf.mxu0 }
 0x1c3   : > { %v4695_v47 = vadd.f32 %v3386_v3, %v1780_v36  ;;  %v1778_v56 = vadd.f32 %v1725_v0, %v4598_v51  ;;  %v1753_v51 = vadd.f32 %v4618_v43, %v4520_v20  ;;  %v1754_v20 = vadd.f32 %v4626_v2, %v4526_v40 }
 0x1c4   : > { %v3355_v19 = vpop.f32.mrf.mxu1  ;;  %v1939_v60 = vpop.f32.mrf.mxu0 }
 0x1c5   : > { %v4698_v34 = vadd.f32 %v1926_v18, %v1778_v56  ;;  %v1783_v8 = vadd.f32 %v3355_v19, %v4601_v30  ;;  %v1954_v27 = vadd.f32 %v4614_v39, %v1753_v51 }
 0x1c6   : > { %v1738_v15 = vpop.f32.mrf.mxu1  ;;  %v3390_v28 = vpop.f32.mrf.mxu0 }
 0x1c7   : > { %v4703_v29 = vadd.f32 %v3389_v59, %v1783_v8  ;;  %v1781_v23 = vadd.f32 %v1738_v15, %v4604_v13 }
 0x1c8   : > { %v3356_v54 = vpop.f32.mrf.mxu1  ;;  %v1942_v24 = vpop.f32.mrf.mxu0 }
 0x1c9   : > { %v4708_v44 = vadd.f32 %v1939_v60, %v1781_v23  ;;  %v1784_v1 = vadd.f32 %v3356_v54, %v4609_v11 }
 0x1ca   : > { %v1741_v50 = vpop.f32.mrf.mxu1  ;;  %v3429_v30 = vpop.f32.mrf.mxu0 }
 0x1cb   : > { %v4714_v53 = vadd.f32 %v3390_v28, %v1784_v1  ;;  %v1782_v13 = vadd.f32 %v1741_v50, %v4616_v6  ;;  %v1955_v6 = vadd.f32 %v4624_v41, %v1754_v20 }
 0x1cc   : > { %v3395_v57 = vpop.f32.mrf.mxu1  ;;  %v2245_v3 = vpop.f32.mrf.mxu0 }
 0x1cd   : > { %v4720_v43 = vadd.f32 %v1942_v24, %v1782_v13  ;;  %v2168_v11 = vadd.f32 %v3395_v57, %v1956_v16 }
 0x1ce   : > { %v2039_v38 = vpop.f32.mrf.mxu1  ;;  %v3430_v18 = vpop.f32.mrf.mxu0 }
 0x1cf   : > { %v2374_v36 = vadd.f32 %v3429_v30, %v2168_v11  ;;  %v2166_v63 = vadd.f32 %v2039_v38, %v1954_v27 }
 0x1d0   : > { %v3396_v62 = vpop.f32.mrf.mxu1  ;;  %v2248_v0 = vpop.f32.mrf.mxu0 }
 0x1d1   : > { %v2406_v59 = vmax.f32 %v2374_v36, 0.0  ;;  %v2372_v56 = vadd.f32 %v2245_v3, %v2166_v63  ;;  %v2169_v19 = vadd.f32 %v3396_v62, %v1957_v12 }
 0x1d2   : > { %v2042_v39 = vpop.f32.mrf.mxu1  ;;  %v3433_v60 = vpop.f32.mrf.mxu0 }
 0x1d3   : > { %v2404_v8 = vmax.f32 %v2372_v56, 0.0  ;;  %v2375_v40 = vadd.f32 %v3430_v18, %v2169_v19  ;;  %v2167_v2 = vadd.f32 %v2042_v39, %v1955_v6  ;;  %v2472_v15 = vrot.slane %v2406_v59, 7 }
 0x1d4   : > { %v3399_v28 = vpop.f32.mrf.mxu1  ;;  %v2261_v37 = vpop.f32.mrf.mxu0 }
 0x1d5   : > { %v2407_v23 = vmax.f32 %v2375_v40, 0.0  ;;  %v2373_v54 = vadd.f32 %v2248_v0, %v2167_v2  ;;  %v2172_v17 = vadd.f32 %v3399_v28, %v4629_v4  ;;  %2523 = vrot.lane.b32.xlu1 %v2472_v15, %s3624_s25  ;;  %v2469_v24 = vrot.slane %v2404_v8, 7 }
 0x1d6   : > { %v2055_v41 = vpop.f32.mrf.mxu1  ;;  %v3434_v51 = vpop.f32.mrf.mxu0 }
 0x1d7   : > { %v2473_v1 = vrot.slane %v2407_v23, 7  ;;  %v2405_v50 = vmax.f32 %v2373_v54, 0.0  ;;  %v2378_v30 = vadd.f32 %v3433_v60, %v2172_v17  ;;  %v2170_v16 = vadd.f32 %v2055_v41, %v4632_v58  ;;  %2517 = vrot.lane.b32.xlu0 %v2469_v24, %s3624_s25 }
 0x1d8   : > { %v3400_v9 = vpop.f32.mrf.mxu1  ;;  %v2264_v13 = vpop.f32.mrf.mxu0 }
 0x1d9   : > { %v2470_v57 = vrot.slane %v2405_v50, 7  ;;  %v2376_v3 = vadd.f32 %v2261_v37, %v2170_v16  ;;  %v2173_v4 = vadd.f32 %v3400_v9, %v4635_v5  ;;  %2527 = vrot.lane.b32.xlu1 %v2473_v1, %s3624_s25  ;;  %v2474_v20 = vsel %vm2468_vm4, %v2472_v15, %v2473_v1 }
 0x1da   : > { %v2058_v27 = vpop.f32.mrf.mxu1  ;;  %v3437_v11 = vpop.f32.mrf.mxu0  ;;  %v2410_v38 = vmax.f32 %v2378_v30, 0.0 }
 0x1db   : > { %v2379_v18 = vadd.f32 %v3434_v51, %v2173_v4  ;;  %v2171_v12 = vadd.f32 %v2058_v27, %v4638_v55  ;;  %2525 = vrot.lane.b32.xlu0 %v2474_v20, %s3624_s25  ;;  %v2471_v36 = vsel %vm2468_vm4, %v2469_v24, %v2470_v57  ;;  %v2408_v62 = vmax.f32 %v2376_v3, 0.0 }
 0x1dc   : > { %v3403_v58 = vpop.f32.mrf.mxu1  ;;  %v2277_v63 = vpop.f32.mrf.mxu0  ;;  %v2478_v19 = vrot.slane %v2410_v38, 7 }
 0x1dd   : > { %v2411_v0 = vmax.f32 %v2379_v18, 0.0  ;;  %v2377_v6 = vadd.f32 %v2264_v13, %v2171_v12  ;;  %v2176_v5 = vadd.f32 %v3403_v58, %v4641_v42  ;;  %2521 = vrot.lane.b32.xlu1 %v2470_v57, %s3624_s25  ;;  %v2475_v15 = vrot.slane %v2408_v62, 7 }
 0x1de   : > { %v2071_v59 = vpop.f32.mrf.mxu1  ;;  %v3438_v56 = vpop.f32.mrf.mxu0 }
 0x1df   : > { %v2479_v39 = vrot.slane %v2411_v0, 7  ;;  %v2409_v60 = vmax.f32 %v2377_v6, 0.0  ;;  %v2174_v55 = vadd.f32 %v2071_v59, %v4644_v22  ;;  %2519 = vrot.lane.b32.xlu0 %v2471_v36, %s3624_s25  ;;  %v2382_v8 = vadd.f32 %v3437_v11, %v2176_v5 }
 0x1e0   : > { %v3404_v40 = vpop.f32.mrf.mxu1  ;;  %v2280_v2 = vpop.f32.mrf.mxu0 }
 0x1e1   : > { %v2476_v28 = vrot.slane %v2409_v60, 7  ;;  %v2177_v37 = vadd.f32 %v3404_v40, %v4647_v61  ;;  %2535 = vrot.lane.b32.xlu1 %v2478_v19, %s3624_s25  ;;  %v2380_v42 = vadd.f32 %v2277_v63, %v2174_v55  ;;  %v2480_v17 = vsel %vm2468_vm4, %v2478_v19, %v2479_v39 }
 0x1e2   : > { %v2074_v23 = vpop.f32.mrf.mxu1  ;;  %v3441_v54 = vpop.f32.mrf.mxu0  ;;  %v2414_v22 = vmax.f32 %v2382_v8, 0.0 }
 0x1e3   : > { %v2175_v24 = vadd.f32 %v2074_v23, %v4650_v32  ;;  %v2383_v41 = vadd.f32 %v3438_v56, %v2177_v37  ;;  %2529 = vrot.lane.b32.xlu0 %v2475_v15, %s3624_s25  ;;  %v2477_v50 = vsel %vm2468_vm4, %v2475_v15, %v2476_v28  ;;  %v2412_v9 = vmax.f32 %v2380_v42, 0.0 }
 0x1e4   : > { %v3407_v51 = vpop.f32.mrf.mxu1  ;;  %v2293_v1 = vpop.f32.mrf.mxu0  ;;  %v2484_v27 = vrot.slane %v2414_v22, 7 }
 0x1e5   : > { %v2415_v30 = vmax.f32 %v2383_v41, 0.0  ;;  %v2180_v61 = vadd.f32 %v3407_v51, %v4653_v45  ;;  %v2381_v16 = vadd.f32 %v2280_v2, %v2175_v24  ;;  %2539 = vrot.lane.b32.xlu1 %v2479_v39, %s3624_s25  ;;  %v2481_v45 = vrot.slane %v2412_v9, 7 }
 0x1e6   : > { %v2087_v13 = vpop.f32.mrf.mxu1  ;;  %v3442_v57 = vpop.f32.mrf.mxu0 }
 0x1e7   : > { %v2485_v3 = vrot.slane %v2415_v30, 7  ;;  %v2413_v4 = vmax.f32 %v2381_v16, 0.0  ;;  %v2178_v32 = vadd.f32 %v2087_v13, %v4656_v35  ;;  %2537 = vrot.lane.b32.xlu0 %v2480_v17, %s3624_s25  ;;  %v2386_v20 = vadd.f32 %v3441_v54, %v2180_v61 }
 0x1e8   : > { %v3408_v11 = vpop.f32.mrf.mxu1  ;;  %v2296_v38 = vpop.f32.mrf.mxu0 }
 0x1e9   : > { %v2482_v18 = vrot.slane %v2413_v4, 7  ;;  %v2181_v12 = vadd.f32 %v3408_v11, %v4659_v26  ;;  %2531 = vrot.lane.b32.xlu1 %v2477_v50, %s3624_s25  ;;  %v2384_v58 = vadd.f32 %v2293_v1, %v2178_v32  ;;  %v2486_v62 = vsel %vm2468_vm4, %v2484_v27, %v2485_v3 }
 0x1ea   : > { %v2090_v36 = vpop.f32.mrf.mxu1  ;;  %v3445_v63 = vpop.f32.mrf.mxu0  ;;  %v2418_v6 = vmax.f32 %v2386_v20, 0.0 }
 0x1eb   : > { %v2179_v0 = vadd.f32 %v2090_v36, %v4662_v48  ;;  %v2387_v35 = vadd.f32 %v3442_v57, %v2181_v12  ;;  %2533 = vrot.lane.b32.xlu0 %v2476_v28, %s3624_s25  ;;  %v2483_v56 = vsel %vm2468_vm4, %v2481_v45, %v2482_v18  ;;  %v2416_v60 = vmax.f32 %v2384_v58, 0.0 }
 0x1ec   : > { %v3411_v5 = vpop.f32.mrf.mxu1  ;;  %v2309_v59 = vpop.f32.mrf.mxu0  ;;  %v2490_v15 = vrot.slane %v2418_v6, 7 }
 0x1ed   : > { %v2419_v19 = vmax.f32 %v2387_v35, 0.0  ;;  %v2184_v26 = vadd.f32 %v3411_v5, %v4665_v52  ;;  %v2385_v39 = vadd.f32 %v2296_v38, %v2179_v0  ;;  %2547 = vrot.lane.b32.xlu1 %v2484_v27, %s3624_s25  ;;  %v2487_v54 = vrot.slane %v2416_v60, 7 }
 0x1ee   : > { %v2103_v55 = vpop.f32.mrf.mxu1  ;;  %v3446_v8 = vpop.f32.mrf.mxu0 }
 0x1ef   : > { %v2491_v40 = vrot.slane %v2419_v19, 7  ;;  %v2417_v2 = vmax.f32 %v2385_v39, 0.0  ;;  %v2182_v48 = vadd.f32 %v2103_v55, %v4668_v25  ;;  %2541 = vrot.lane.b32.xlu0 %v2481_v45, %s3624_s25  ;;  %v2390_v28 = vadd.f32 %v3445_v63, %v2184_v26 }
 0x1f0   : > { %v3412_v37 = vpop.f32.mrf.mxu1  ;;  %v2312_v42 = vpop.f32.mrf.mxu0 }
 0x1f1   : > { %v4758_v23 = vrot.slane %v2417_v2, 7  ;;  %v2185_v52 = vadd.f32 %v3412_v37, %v4671_v31  ;;  %2551 = vrot.lane.b32.xlu1 %v2485_v3, %s3624_s25  ;;  %v2388_v17 = vadd.f32 %v2309_v59, %v2182_v48  ;;  %v2492_v22 = vsel %vm2468_vm4, %v2490_v15, %v2491_v40 }
 0x1f2   : > { %v2106_v24 = vpop.f32.mrf.mxu1  ;;  %v3449_v41 = vpop.f32.mrf.mxu0  ;;  %v2422_v1 = vmax.f32 %v2390_v28, 0.0 }
 0x1f3   : > { %v2183_v25 = vadd.f32 %v2106_v24, %v4674_v10  ;;  %v2391_v51 = vadd.f32 %v3446_v8, %v2185_v52  ;;  %2549 = vrot.lane.b32.xlu0 %v2486_v62, %s3624_s25  ;;  %v2489_v61 = vsel %vm2468_vm4, %v2487_v54, %v4758_v23  ;;  %v2420_v13 = vmax.f32 %v2388_v17, 0.0 }
 0x1f4   : > { %v3415_v50 = vpop.f32.mrf.mxu1  ;;  %v2325_v30 = vpop.f32.mrf.mxu0  ;;  %v2496_v27 = vrot.slane %v2422_v1, 7 }
 0x1f5   : > { %v2423_v31 = vmax.f32 %v2391_v51, 0.0  ;;  %v2188_v16 = vadd.f32 %v3415_v50, %v4677_v21  ;;  %v2389_v9 = vadd.f32 %v2312_v42, %v2183_v25  ;;  %2543 = vrot.lane.b32.xlu1 %v2483_v56, %s3624_s25  ;;  %v2493_v45 = vrot.slane %v2420_v13, 7 }
 0x1f6   : > { %v2119_v57 = vpop.f32.mrf.mxu1  ;;  %v3450_v3 = vpop.f32.mrf.mxu0 }
 0x1f7   : > { %v4769_v4 = vrot.slane %v2423_v31, 7  ;;  %v2421_v10 = vmax.f32 %v2389_v9, 0.0  ;;  %v2186_v32 = vadd.f32 %v2119_v57, %v4680_v33  ;;  %2545 = vrot.lane.b32.xlu0 %v2482_v18, %s3624_s25  ;;  %v2394_v20 = vadd.f32 %v3449_v41, %v2188_v16 }
 0x1f8   : > { %v3416_v11 = vpop.f32.mrf.mxu1  ;;  %v2328_v38 = vpop.f32.mrf.mxu0 }
 0x1f9   : > { %v4773_v12 = vrot.slane %v2421_v10, 7  ;;  %v2189_v21 = vadd.f32 %v3416_v11, %v4683_v14  ;;  %2559 = vrot.lane.b32.xlu1 %v2490_v15, %s3624_s25  ;;  %v2392_v58 = vadd.f32 %v2325_v30, %v2186_v32  ;;  %v4779_v62 = vsel %vm2468_vm4, %v2496_v27, %v4769_v4 }
 0x1fa   : > { %v2122_v36 = vpop.f32.mrf.mxu1  ;;  %v3453_v63 = vpop.f32.mrf.mxu0  ;;  %v2426_v0 = vmax.f32 %v2394_v20, 0.0 }
 0x1fb   : > { %v2187_v33 = vadd.f32 %v2122_v36, %v4686_v46  ;;  %v2395_v18 = vadd.f32 %v3450_v3, %v2189_v21  ;;  %2553 = vrot.lane.b32.xlu0 %v2487_v54, %s3624_s25  ;;  %v2495_v14 = vsel %vm2468_vm4, %v2493_v45, %v4773_v12  ;;  %v2424_v19 = vmax.f32 %v2392_v58, 0.0 }
 0x1fc   : > { %v3419_v35 = vpop.f32.mrf.mxu1  ;;  %v2341_v6 = vpop.f32.mrf.mxu0  ;;  %v2502_v8 = vrot.slane %v2426_v0, 7  ;;  %v3514_v0 = vld [vmem:[%s3710_s3 + $0x30] sm:$0xff] }
 0x1fd   : > { %v2427_v5 = vmax.f32 %v2395_v18, 0.0  ;;  %v2192_v59 = vadd.f32 %v3419_v35, %v4689_v49  ;;  %v2393_v56 = vadd.f32 %v2328_v38, %v2187_v33  ;;  %2563 = vrot.lane.b32.xlu1 %v2491_v40, %s3624_s25  ;;  %v2499_v40 = vrot.slane %v2424_v19, 7 }
 0x1fe   : > { %v2135_v26 = vpop.f32.mrf.mxu1  ;;  %v3454_v39 = vpop.f32.mrf.mxu0 }
 0x1ff   : > { %v4787_v60 = vrot.slane %v2427_v5, 7  ;;  %v2425_v46 = vmax.f32 %v2393_v56, 0.0  ;;  %v2190_v55 = vadd.f32 %v2135_v26, %v4692_v7  ;;  %2561 = vrot.lane.b32.xlu0 %v2492_v22, %s3624_s25  ;;  %v2398_v2 = vadd.f32 %v3453_v63, %v2192_v59  ;;  %v3516_v56 = vld [vmem:[%s3710_s3 + $0x40] sm:$0x3] }
 0x200   : > { %v3420_v48 = vpop.f32.mrf.mxu1  ;;  %v2344_v15 = vpop.f32.mrf.mxu0 }
 0x201   : > { %v2500_v28 = vrot.slane %v2425_v46, 7  ;;  %v2193_v49 = vadd.f32 %v3420_v48, %v4695_v47  ;;  %2555 = vrot.lane.b32.xlu1 %v2489_v61, %s3624_s25  ;;  %v2396_v37 = vadd.f32 %v2341_v6, %v2190_v55  ;;  %v2504_v54 = vsel %vm2468_vm4, %v2502_v8, %v4787_v60  ;;  %v3518_v55 = vld [vmem:[%s3710_s3 + $0x28] sm:$0x3]  ;;  %v3519_v48 = vld [vmem:[%s3710_s3 + $0x20] sm:$0xff] }
 0x202   : > { %v2138_v42 = vpop.f32.mrf.mxu1  ;;  %v3457_v52 = vpop.f32.mrf.mxu0  ;;  %v2430_v24 = vmax.f32 %v2398_v2, 0.0 }
 0x203   : > { %v2191_v7 = vadd.f32 %v2138_v42, %v4698_v34  ;;  %v2399_v17 = vadd.f32 %v3454_v39, %v2193_v49  ;;  %2557 = vrot.lane.b32.xlu0 %v4758_v23, %s3624_s25  ;;  %v2501_v47 = vsel %vm2468_vm4, %v2499_v40, %v2500_v28  ;;  %v2428_v50 = vmax.f32 %v2396_v37, 0.0  ;;  %v3517_v39 = vld [vmem:[%s3710_s3 + $0x38] sm:$0xff]  ;;  %v3520_v49 = vld [vmem:[%s3710_s3 + $0x60] sm:$0xff]  ;;  %v3521_v42 = vld [vmem:[%s3710_s3 + $0x48] sm:$0xff] }
 0x204   : > { %v3423_v41 = vpop.f32.mrf.mxu1  ;;  %v2357_v22 = vpop.f32.mrf.mxu0  ;;  %v2508_v23 = vrot.slane %v2430_v24, 7 }
 0x205   : > { %v2431_v25 = vmax.f32 %v2399_v17, 0.0  ;;  %v2196_v51 = vadd.f32 %v3423_v41, %v4703_v29  ;;  %v2397_v1 = vadd.f32 %v2344_v15, %v2191_v7  ;;  %2571 = vrot.lane.b32.xlu1 %v2496_v27, %s3624_s25  ;;  %v2505_v29 = vrot.slane %v2428_v50, 7  ;;  %v3522_v7 = vld [vmem:[%s3710_s3 + $0x70] sm:$0x3]  ;;  %v3523_v41 = vld [vmem:[%s3710_s3 + $0x68] sm:$0xff] }
 0x206   : > { %v2151_v30 = vpop.f32.mrf.mxu1  ;;  %v3458_v61 = vpop.f32.mrf.mxu0  ;;  %v3525_v50 = vld [vmem:[%s3710_s3 + $0x58] sm:$0x3] }
 0x207   : > { %v2509_v31 = vrot.slane %v2431_v25, 7  ;;  %v2429_v34 = vmax.f32 %v2397_v1, 0.0  ;;  %v2194_v16 = vadd.f32 %v2151_v30, %v4708_v44  ;;  %v2402_v9 = vadd.f32 %v3457_v52, %v2196_v51  ;;  %2565 = vrot.lane.b32.xlu0 %v2493_v45, %s3624_s25  ;;  %v3524_v25 = vld [vmem:[%s3710_s3 + $0x50] sm:$0xff] }
 0x208   : > { %v3424_v13 = vpop.f32.mrf.mxu1  ;;  %v2360_v27 = vpop.f32.mrf.mxu0 }
 0x209   : > { %v2506_v57 = vrot.slane %v2429_v34, 7  ;;  %v2197_v3 = vadd.f32 %v3424_v13, %v4714_v53  ;;  %v2400_v10 = vadd.f32 %v2357_v22, %v2194_v16  ;;  %2575 = vrot.lane.b32.xlu1 %v4769_v4, %s3624_s25  ;;  %v2510_v20 = vsel %vm2468_vm4, %v2508_v23, %v2509_v31 }
 0x20a   : > { %v2154_v32 = vpop.f32.mrf.mxu1  ;;  %v2434_v11 = vmax.f32 %v2402_v9, 0.0  ;;  %v3527_v9 = vld [vmem:[%s3710_s3 + $0x78] sm:$0xff] }
 0x20b   : > { %v2195_v44 = vadd.f32 %v2154_v32, %v4720_v43  ;;  %v2403_v38 = vadd.f32 %v3458_v61, %v2197_v3  ;;  %2573 = vrot.lane.b32.xlu0 %v4779_v62, %s3624_s25  ;;  %v2507_v21 = vsel %vm2468_vm4, %v2505_v29, %v2506_v57  ;;  %v2432_v45 = vmax.f32 %v2400_v10, 0.0 }
 0x20c   : > { %v2514_v4 = vrot.slane %v2434_v11, 7 }
 0x20d   : > { %v2435_v53 = vmax.f32 %v2403_v38, 0.0  ;;  %v2401_v58 = vadd.f32 %v2360_v27, %v2195_v44  ;;  %2567 = vrot.lane.b32.xlu1 %v2495_v14, %s3624_s25  ;;  %v2511_v33 = vrot.slane %v2432_v45, 7  ;;  %v3515_v14 = vld [vmem:[%s3710_s3 + $0x18] sm:$0xff]  ;;  %v3531_v38 = vld [vmem:[%s3710_s3 + $0x88] sm:$0x3] }
 0x20f   : > { %v2515_v36 = vrot.slane %v2435_v53, 7  ;;  %v2433_v63 = vmax.f32 %v2401_v58, 0.0  ;;  %2569 = vrot.lane.b32.xlu0 %v4773_v12, %s3624_s25  ;;  %v3532_v53 = vld [vmem:[%s3710_s3 + $0xc0] sm:$0xff] }
 0x211   : > { %v2512_v18 = vrot.slane %v2433_v63, 7  ;;  %2583 = vrot.lane.b32.xlu1 %v2502_v8, %s3624_s25  ;;  %v2516_v43 = vsel %vm2468_vm4, %v2514_v4, %v2515_v36 }
 0x213   : > { %2577 = vrot.lane.b32.xlu0 %v2499_v40, %s3624_s25  ;;  %v2513_v62 = vsel %vm2468_vm4, %v2511_v33, %v2512_v18 }
 0x215   : > { %2587 = vrot.lane.b32.xlu1 %v4787_v60, %s3624_s25 }
 0x217   : > { %2585 = vrot.lane.b32.xlu0 %v2504_v54, %s3624_s25 }
 0x219   : > { %2579 = vrot.lane.b32.xlu1 %v2501_v47, %s3624_s25 }
 0x21b   : > { %2581 = vrot.lane.b32.xlu0 %v2500_v28, %s3624_s25 }
 0x21d   : > { %2595 = vrot.lane.b32.xlu1 %v2508_v23, %s3624_s25 }
 0x21f   : > { %2589 = vrot.lane.b32.xlu0 %v2505_v29, %s3624_s25  ;;  %v3529_v29 = vld [vmem:[%s3710_s3 + $0x98] sm:$0xff] }
 0x221   : > { %2599 = vrot.lane.b32.xlu1 %v2509_v31, %s3624_s25  ;;  %v3526_v31 = vld [vmem:[%s3710_s3 + $0x90] sm:$0xff] }
 0x223   : > { %2597 = vrot.lane.b32.xlu0 %v2510_v20, %s3624_s25  ;;  %v3530_v20 = vld [vmem:[%s3710_s3 + $0x80] sm:$0xff] }
 0x225   : > { %2591 = vrot.lane.b32.xlu1 %v2507_v21, %s3624_s25 }
 0x227   : > { %2593 = vrot.lane.b32.xlu0 %v2506_v57, %s3624_s25  ;;  %v3528_v57 = vld [vmem:[%s3710_s3 + $0xa0] sm:$0x3] }
 0x229   : > { %2607 = vrot.lane.b32.xlu1 %v2514_v4, %s3624_s25 }
 0x22b   : > { %2601 = vrot.lane.b32.xlu0 %v2511_v33, %s3624_s25 }
 0x22d   : > { %2603 = vrot.lane.b32.xlu1 %v2513_v62, %s3624_s25 }
 0x22f   : > { %2605 = vrot.lane.b32.xlu0 %v2512_v18, %s3624_s25  ;;  %v3534_v18 = vld [vmem:[%s3710_s3 + $0xd0] sm:$0x3] }
 0x231   : > { %2611 = vrot.lane.b32.xlu1 %v2515_v36, %s3624_s25  ;;  %v3533_v36 = vld [vmem:[%s3710_s3 + $0xa8] sm:$0xff] }
 0x233   : > { %2609 = vrot.lane.b32.xlu0 %v2516_v43, %s3624_s25 }
 0x247   : > { %v2524_v12 = vpop.permute.xlu1 %2523 }
 0x248   : > { %v2664_v35 = vsel %vm429_vm2, %v3514_v0, %v2524_v12  ;;  %v3535_v12 = vld [vmem:[%s3710_s3 + $0xc8] sm:$0xff] }
 0x249   : > { %2715 = vst.msk [vmem:[%s4840_s28 + $0xf] sm:$0xfe] %vm2709_vm5, %v2664_v35  ;;  %v2518_v6 = vpop.permute.xlu0 %2517 }
 0x24a   : > { %v2661_v5 = vsel %vm429_vm2, %v3515_v14, %v2518_v6  ;;  %v3536_v6 = vld [vmem:[%s3710_s3 + $0xb0] sm:$0xff] }
 0x24b   : > { %2710 = vst.msk [vmem:[%s4840_s28 - $0x1] sm:$0xfe] %vm2709_vm5, %v2661_v5  ;;  %v2528_v59 = vpop.permute.xlu1 %2527 }
 0x24c   : > { %v2666_v19 = vsel %vm429_vm2, %v3516_v56, %v2528_v59  ;;  %v3537_v59 = vld [vmem:[%s3710_s3 + $0xb8] sm:$0x3] }
 0x24d   : > { %2717 = vst.msk [vmem:[%s4840_s28 + $0x1f] sm:$0x1] %vm2713_vm6, %v2666_v19  ;;  %v2526_v26 = vpop.permute.xlu0 %2525 }
 0x24e   : > { %v2665_v60 = vsel %vm429_vm2, %v3517_v39, %v2526_v26  ;;  %v3538_v26 = vld [vmem:[%s3710_s3 + $0xf0] sm:$0xff] }
 0x24f   : > { %2716 = vst.msk [vmem:[%s4840_s28 + $0x17] sm:$0xff] %vm2711_vm7, %v2665_v60  ;;  %v2522_v46 = vpop.permute.xlu1 %2521 }
 0x250   : > { %v2663_v8 = vsel %vm429_vm2, %v3518_v55, %v2522_v46  ;;  %v3539_v46 = vld [vmem:[%s3710_s3 + $0xd8] sm:$0xff] }
 0x251   : > { %2714 = vst.msk [vmem:[%s4840_s28 + $0xf] sm:$0x1] %vm2713_vm6, %v2663_v8  ;;  %v2520_v2 = vpop.permute.xlu0 %2519 }
 0x252   : > { %v2662_v15 = vsel %vm429_vm2, %v3519_v48, %v2520_v2  ;;  %v3540_v2 = vld [vmem:[%s3710_s3 + $0x100] sm:$0x3] }
 0x253   : > { %2712 = vst.msk [vmem:[%s4840_s28 + $0x7] sm:$0xff] %vm2711_vm7, %v2662_v15  ;;  %v2536_v28 = vpop.permute.xlu1 %2535 }
 0x254   : > { %v2670_v40 = vsel %vm429_vm2, %v3520_v49, %v2536_v28  ;;  %v3541_v28 = vld [vmem:[%s3710_s3 + $0xf8] sm:$0xff] }
 0x255   : > { %2721 = vst.msk [vmem:[%s4840_s28 + $0x2f] sm:$0xfe] %vm2709_vm5, %v2670_v40  ;;  %v2530_v37 = vpop.permute.xlu0 %2529 }
 0x256   : > { %v2667_v52 = vsel %vm429_vm2, %v3521_v42, %v2530_v37  ;;  %v3542_v37 = vld [vmem:[%s3710_s3 + $0xe0] sm:$0xff] }
 0x257   : > { %2718 = vst.msk [vmem:[%s4840_s28 + $0x1f] sm:$0xfe] %vm2709_vm5, %v2667_v52  ;;  %v2540_v54 = vpop.permute.xlu1 %2539 }
 0x258   : > { %v2672_v17 = vsel %vm429_vm2, %v3522_v7, %v2540_v54  ;;  %v3543_v54 = vld [vmem:[%s3710_s3 + $0xe8] sm:$0x3] }
 0x259   : > { %2723 = vst.msk [vmem:[%s4840_s28 + $0x3f] sm:$0x1] %vm2713_vm6, %v2672_v17  ;;  %v2538_v24 = vpop.permute.xlu0 %2537 }
 0x25a   : > { %v2671_v22 = vsel %vm429_vm2, %v3523_v41, %v2538_v24  ;;  %v3544_v24 = vld [vmem:[%s3710_s3 + $0x120] sm:$0xff] }
 0x25b   : > { %2722 = vst.msk [vmem:[%s4840_s28 + $0x37] sm:$0xff] %vm2711_vm7, %v2671_v22  ;;  %v2532_v47 = vpop.permute.xlu1 %2531 }
 0x25c   : > { %v2668_v51 = vsel %vm429_vm2, %v3524_v25, %v2532_v47  ;;  %v3545_v47 = vld [vmem:[%s3710_s3 + $0x108] sm:$0xff] }
 0x25d   : > { %2719 = vst.msk [vmem:[%s4840_s28 + $0x27] sm:$0xff] %vm2711_vm7, %v2668_v51  ;;  %v2534_v1 = vpop.permute.xlu0 %2533 }
 0x25e   : > { %v2669_v30 = vsel %vm429_vm2, %v3525_v50, %v2534_v1  ;;  %v3546_v1 = vld [vmem:[%s3710_s3 + $0x130] sm:$0x3] }
 0x25f   : > { %2720 = vst.msk [vmem:[%s4840_s28 + $0x2f] sm:$0x1] %vm2713_vm6, %v2669_v30  ;;  %v2548_v61 = vpop.permute.xlu1 %2547 }
 0x260   : > { %v2676_v34 = vsel %vm429_vm2, %v3526_v31, %v2548_v61  ;;  %v3547_v61 = vld [vmem:[%s3710_s3 + $0x128] sm:$0xff] }
 0x261   : > { %2727 = vst.msk [vmem:[%s4840_s28 + $0x4f] sm:$0xfe] %vm2709_vm5, %v2676_v34  ;;  %v2542_v16 = vpop.permute.xlu0 %2541 }
 0x262   : > { %v2673_v23 = vsel %vm429_vm2, %v3527_v9, %v2542_v16  ;;  %v3548_v16 = vld [vmem:[%s3710_s3 + $0x110] sm:$0xff] }
 0x263   : > { %2724 = vst.msk [vmem:[%s4840_s28 + $0x3f] sm:$0xfe] %vm2709_vm5, %v2673_v23  ;;  %v2552_v13 = vpop.permute.xlu1 %2551 }
 0x264   : > { %v2678_v3 = vsel %vm429_vm2, %v3528_v57, %v2552_v13  ;;  %v3549_v13 = vld [vmem:[%s3710_s3 + $0x118] sm:$0x3] }
 0x265   : > { %2729 = vst.msk [vmem:[%s4840_s28 + $0x5f] sm:$0x1] %vm2713_vm6, %v2678_v3  ;;  %v2550_v10 = vpop.permute.xlu0 %2549 }
 0x266   : > { %v2677_v32 = vsel %vm429_vm2, %v3529_v29, %v2550_v10  ;;  %v3550_v10 = vld [vmem:[%s3710_s3 + $0x150] sm:$0xff] }
 0x267   : > { %2728 = vst.msk [vmem:[%s4840_s28 + $0x57] sm:$0xff] %vm2711_vm7, %v2677_v32  ;;  %v2544_v27 = vpop.permute.xlu1 %2543 }
 0x268   : > { %v2674_v11 = vsel %vm429_vm2, %v3530_v20, %v2544_v27  ;;  %v3551_v27 = vld [vmem:[%s3710_s3 + $0x138] sm:$0xff] }
 0x269   : > { %2725 = vst.msk [vmem:[%s4840_s28 + $0x47] sm:$0xff] %vm2711_vm7, %v2674_v11  ;;  %v2546_v44 = vpop.permute.xlu0 %2545 }
 0x26a   : > { %v2675_v21 = vsel %vm429_vm2, %v3531_v38, %v2546_v44  ;;  %v3552_v44 = vld [vmem:[%s3710_s3 + $0x160] sm:$0x3] }
 0x26b   : > { %2726 = vst.msk [vmem:[%s4840_s28 + $0x4f] sm:$0x1] %vm2713_vm6, %v2675_v21  ;;  %v2560_v45 = vpop.permute.xlu1 %2559 }
 0x26c   : > { %v2682_v58 = vsel %vm429_vm2, %v3532_v53, %v2560_v45  ;;  %v3553_v45 = vld [vmem:[%s3710_s3 + $0x158] sm:$0xff] }
 0x26d   : > { %2733 = vst.msk [vmem:[%s4840_s28 + $0x6f] sm:$0xfe] %vm2709_vm5, %v2682_v58  ;;  %v2554_v4 = vpop.permute.xlu0 %2553 }
 0x26e   : > { %v2679_v63 = vsel %vm429_vm2, %v3533_v36, %v2554_v4  ;;  %v3554_v4 = vld [vmem:[%s3710_s3 + $0x140] sm:$0xff] }
 0x26f   : > { %2730 = vst.msk [vmem:[%s4840_s28 + $0x5f] sm:$0xfe] %vm2709_vm5, %v2679_v63  ;;  %v2564_v33 = vpop.permute.xlu1 %2563 }
 0x270   : > { %v2684_v43 = vsel %vm429_vm2, %v3534_v18, %v2564_v33  ;;  %v3555_v33 = vld [vmem:[%s3710_s3 + $0x148] sm:$0x3] }
 0x271   : > { %2735 = vst.msk [vmem:[%s4840_s28 + $0x7f] sm:$0x1] %vm2713_vm6, %v2684_v43  ;;  %v2562_v62 = vpop.permute.xlu0 %2561 }
 0x272   : > { %v2683_v0 = vsel %vm429_vm2, %v3535_v12, %v2562_v62  ;;  %v3556_v62 = vld [vmem:[%s3710_s3 + $0x180] sm:$0xff] }
 0x273   : > { %2734 = vst.msk [vmem:[%s4840_s28 + $0x77] sm:$0xff] %vm2711_vm7, %v2683_v0  ;;  %v2556_v35 = vpop.permute.xlu1 %2555 }
 0x274   : > { %v2680_v14 = vsel %vm429_vm2, %v3536_v6, %v2556_v35  ;;  %v3557_v35 = vld [vmem:[%s3710_s3 + $0x168] sm:$0xff] }
 0x275   : > { %2731 = vst.msk [vmem:[%s4840_s28 + $0x67] sm:$0xff] %vm2711_vm7, %v2680_v14  ;;  %v2558_v5 = vpop.permute.xlu0 %2557 }
 0x276   : > { %v2681_v56 = vsel %vm429_vm2, %v3537_v59, %v2558_v5  ;;  %v3558_v5 = vld [vmem:[%s3710_s3 + $0x170] sm:$0xff] }
 0x277   : > { %2732 = vst.msk [vmem:[%s4840_s28 + $0x6f] sm:$0x1] %vm2713_vm6, %v2681_v56  ;;  %v2572_v19 = vpop.permute.xlu1 %2571 }
 0x278   : > { %v2688_v39 = vsel %vm429_vm2, %v3538_v26, %v2572_v19  ;;  %v3559_v19 = vld [vmem:[%s3710_s3 + $0x178] sm:$0x3] }
 0x279   : > { %2739 = vst.msk [vmem:[%s4840_s28 + $0x8f] sm:$0xfe] %vm2709_vm5, %v2688_v39  ;;  %v2566_v60 = vpop.permute.xlu0 %2565 }
 0x27a   : > { %v2685_v55 = vsel %vm429_vm2, %v3539_v46, %v2566_v60  ;;  %v3560_v60 = vld [vmem:[%s3710_s3 + $0x190] sm:$0x3] }
 0x27b   : > { %2736 = vst.msk [vmem:[%s4840_s28 + $0x7f] sm:$0xfe] %vm2709_vm5, %v2685_v55  ;;  %v2576_v8 = vpop.permute.xlu1 %2575 }
 0x27c   : > { %v2690_v48 = vsel %vm429_vm2, %v3540_v2, %v2576_v8  ;;  %v3561_v8 = vld [vmem:[%s3710_s3 + $0x188] sm:$0xff] }
 0x27d   : > { %2741 = vst.msk [vmem:[%s4840_s28 + $0x9f] sm:$0x1] %vm2713_vm6, %v2690_v48  ;;  %v2574_v15 = vpop.permute.xlu0 %2573 }
 0x27e   : > { %v2689_v49 = vsel %vm429_vm2, %v3541_v28, %v2574_v15 }
 0x27f   : > { %2740 = vst.msk [vmem:[%s4840_s28 + $0x97] sm:$0xff] %vm2711_vm7, %v2689_v49  ;;  %v2568_v40 = vpop.permute.xlu1 %2567 }
 0x280   : > { %v2686_v42 = vsel %vm429_vm2, %v3542_v37, %v2568_v40 }
 0x281   : > { %2737 = vst.msk [vmem:[%s4840_s28 + $0x87] sm:$0xff] %vm2711_vm7, %v2686_v42  ;;  %v2570_v52 = vpop.permute.xlu0 %2569 }
 0x282   : > { %v2687_v7 = vsel %vm429_vm2, %v3543_v54, %v2570_v52 }
 0x283   : > { %2738 = vst.msk [vmem:[%s4840_s28 + $0x8f] sm:$0x1] %vm2713_vm6, %v2687_v7  ;;  %v2584_v17 = vpop.permute.xlu1 %2583 }
 0x284   : > { %v2694_v41 = vsel %vm429_vm2, %v3544_v24, %v2584_v17 }
 0x285   : > { %2745 = vst.msk [vmem:[%s4840_s28 + $0xaf] sm:$0xfe] %vm2709_vm5, %v2694_v41  ;;  %v2578_v22 = vpop.permute.xlu0 %2577 }
 0x286   : > { %v2691_v25 = vsel %vm429_vm2, %v3545_v47, %v2578_v22 }
 0x287   : > { %2742 = vst.msk [vmem:[%s4840_s28 + $0x9f] sm:$0xfe] %vm2709_vm5, %v2691_v25  ;;  %v2588_v51 = vpop.permute.xlu1 %2587 }
 0x288   : > { %v2696_v50 = vsel %vm429_vm2, %v3546_v1, %v2588_v51 }
 0x289   : > { %2747 = vst.msk [vmem:[%s4840_s28 + $0xbf] sm:$0x1] %vm2713_vm6, %v2696_v50  ;;  %v2586_v30 = vpop.permute.xlu0 %2585 }
 0x28a   : > { %v2695_v31 = vsel %vm429_vm2, %v3547_v61, %v2586_v30 }
 0x28b   : > { %2746 = vst.msk [vmem:[%s4840_s28 + $0xb7] sm:$0xff] %vm2711_vm7, %v2695_v31  ;;  %v2580_v34 = vpop.permute.xlu1 %2579 }
 0x28c   : > { %v2692_v9 = vsel %vm429_vm2, %v3548_v16, %v2580_v34 }
 0x28d   : > { %2743 = vst.msk [vmem:[%s4840_s28 + $0xa7] sm:$0xff] %vm2711_vm7, %v2692_v9  ;;  %v2582_v23 = vpop.permute.xlu0 %2581 }
 0x28e   : > { %v2693_v57 = vsel %vm429_vm2, %v3549_v13, %v2582_v23 }
 0x28f   : > { %2744 = vst.msk [vmem:[%s4840_s28 + $0xaf] sm:$0x1] %vm2713_vm6, %v2693_v57  ;;  %v2596_v3 = vpop.permute.xlu1 %2595 }
 0x290   : > { %v2700_v29 = vsel %vm429_vm2, %v3550_v10, %v2596_v3 }
 0x291   : > { %2751 = vst.msk [vmem:[%s4840_s28 + $0xcf] sm:$0xfe] %vm2709_vm5, %v2700_v29  ;;  %v2590_v32 = vpop.permute.xlu0 %2589 }
 0x292   : > { %v2697_v20 = vsel %vm429_vm2, %v3551_v27, %v2590_v32 }
 0x293   : > { %2748 = vst.msk [vmem:[%s4840_s28 + $0xbf] sm:$0xfe] %vm2709_vm5, %v2697_v20  ;;  %v2600_v11 = vpop.permute.xlu1 %2599 }
 0x294   : > { %v2702_v38 = vsel %vm429_vm2, %v3552_v44, %v2600_v11 }
 0x295   : > { %2753 = vst.msk [vmem:[%s4840_s28 + $0xdf] sm:$0x1] %vm2713_vm6, %v2702_v38  ;;  %v2598_v21 = vpop.permute.xlu0 %2597 }
 0x296   : > { %v2701_v53 = vsel %vm429_vm2, %v3553_v45, %v2598_v21 }
 0x297   : > { %2752 = vst.msk [vmem:[%s4840_s28 + $0xd7] sm:$0xff] %vm2711_vm7, %v2701_v53  ;;  %v2592_v58 = vpop.permute.xlu1 %2591 }
 0x298   : > { %v2698_v36 = vsel %vm429_vm2, %v3554_v4, %v2592_v58 }
 0x299   : > { %2749 = vst.msk [vmem:[%s4840_s28 + $0xc7] sm:$0xff] %vm2711_vm7, %v2698_v36  ;;  %v2594_v63 = vpop.permute.xlu0 %2593 }
 0x29a   : > { %v2699_v18 = vsel %vm429_vm2, %v3555_v33, %v2594_v63 }
 0x29b   : > { %2750 = vst.msk [vmem:[%s4840_s28 + $0xcf] sm:$0x1] %vm2713_vm6, %v2699_v18  ;;  %v2608_v43 = vpop.permute.xlu1 %2607 }
 0x29c   : > { %v2706_v12 = vsel %vm429_vm2, %v3556_v62, %v2608_v43 }
 0x29d   : > { %2757 = vst.msk [vmem:[%s4840_s28 + $0xef] sm:$0xfe] %vm2709_vm5, %v2706_v12  ;;  %v2602_v0 = vpop.permute.xlu0 %2601 }
 0x29e   : > { %v2703_v6 = vsel %vm429_vm2, %v3557_v35, %v2602_v0 }
 0x29f   : > { %2754 = vst.msk [vmem:[%s4840_s28 + $0xdf] sm:$0xfe] %vm2709_vm5, %v2703_v6  ;;  %v2604_v14 = vpop.permute.xlu1 %2603 }
 0x2a0   : > { %v2704_v59 = vsel %vm429_vm2, %v3558_v5, %v2604_v14 }
 0x2a1   : > { %2755 = vst.msk [vmem:[%s4840_s28 + $0xe7] sm:$0xff] %vm2711_vm7, %v2704_v59  ;;  %v2606_v56 = vpop.permute.xlu0 %2605 }
 0x2a2   : > { %v2705_v26 = vsel %vm429_vm2, %v3559_v19, %v2606_v56 }
 0x2a3   : > { %2756 = vst.msk [vmem:[%s4840_s28 + $0xef] sm:$0x1] %vm2713_vm6, %v2705_v26  ;;  %v2612_v39 = vpop.permute.xlu1 %2611 }
 0x2a4   : > { %v2708_v46 = vsel %vm429_vm2, %v3560_v60, %v2612_v39 }
 0x2a5   : > { %2759 = vst.msk [vmem:[%s4840_s28 + $0xff] sm:$0x1] %vm2713_vm6, %v2708_v46  ;;  %v2610_v55 = vpop.permute.xlu0 %2609 }
 0x2a6   : > { %v2707_v2 = vsel %vm429_vm2, %v3561_v8, %v2610_v55 }
 0x2a7   : > { %2758 = vst.msk [vmem:[%s4840_s28 + $0xf7] sm:$0xff] %vm2711_vm7, %v2707_v2 }
 0x2a8   : > { %3575 = shalt.err (!%p3572_p3)
}
 0x2a9   : > { %s3576_s3 = scalar_lea.hbm %s5031_s6, 4096  ;;  %s3580_s22 = scalar_lea.hbm %s5085_s2, 8192 }
 0x2aa   : > { %p3577_p4 = scmp.ne.s32.totalorder %s5031_s6, %s3576_s3  ;;  %p3581_p9 = scmp.lt.s32.totalorder %s5031_s6, %s5085_s2 }
 0x2ab   : > { %p3582_p10 = scmp.lt.s32.totalorder %s3580_s22, %s3576_s3 }
 0x2ac   : > { %p3578_p7 = pnand %p3577_p4, %p3681_p5 }
 0x2ad   : > { %p3583_p11 = por %p3582_p10, %p3581_p9 }
 0x2ae   : > { %p3579_p8 = pneg %p3578_p7 }
 0x2b0   : > { %p3584_p12 = pnand %p3583_p11, %p3579_p8 }
 0x2b2   : > { %3587 = shalt.err (!%p3584_p12)
}
 0x2b3   : > { %s3626_s25 = smov 128   ;;  %s3627_s26 = smov 8  }
 0x2b4   : > { %3472 = dma.vmem_to_hbm [thread:$0]  (%p3681_p5), %s5033_s30, 4096, %s5031_s6, %s5043_s13, %s3626_s25, %s3626_s25, %s3627_s26  }
 0x2b5 PF: > { %p3478_p13 = scmp.ge.s32.totalorder %s3622_s12, 2  ;;  %s2789_s27 = sand.u32 1, %s3610_s9  }
 0x2b6   : > { %s2790_s28 = scalar_lea.sflag [#allocation3], %s2789_s27 }
 0x2b7   : > { %p3475_p0 = pnand %p3478_p13, %p3685_p6 }
 0x2b9   : > { %p3476_p1 = pneg %p3475_p0 }
 0x2bb   : > { %3605 = dma.done.wait (%p3476_p1), %s2790_s28, 4096  }
 0x2bc   : > { %3607 = vsyncadd (%p3476_p1), %s2790_s28, 4294963200  ;;  %p12_p2 = scmp.ge.s32.totalorder %s3668_s15, 4   ;;  %s5107_s9 = smov %s3614_s10 }
 0x2bd   : > { %s5108_s10 = smov %s3618_s11  ;;  %s5109_s11 = smov %s3679_s18 }
 0x2be   : > { %s5110_s12 = smov %s3668_s15  ;;  %14 = sbr.rel (!%p12_p2) target bundleno = 3 (0x3), region = 71 }
 0x2c3   :  { %2795 = vsyncpa [#allocation3], 1 }
 0x2c4   :  { %2797 = vsyncpa [#allocation3 + $0x1], 1 }

</bundles_post_ra>
